<compile_context>
chip_gen: v7x
topology: tpu7x:2x2x1
jax: 0.10.0
libtpu: 0.0.40
codegen_flags: <defaults>
</compile_context>

<pallas_src>
import functools
import math

import jax
import jax.numpy as jnp
from jax.experimental import pallas as pl
from jax.experimental.pallas import tpu as pltpu

LANE = 128


def _round_up(x, m):
    return ((x + m - 1) // m) * m


def _layer_norm_masked(x, gamma, beta, real_dim, eps=1e-5):
    """LayerNorm over the first `real_dim` features of a lane-padded array.

    Requires padded columns of `x` to be exactly zero (maintained by zero-padded
    weights/biases).  gamma/beta are zero in padded columns so padded outputs stay
    zero.  Two-pass (centered) variance, corrected for the zero padding.
    """
    n_pad = x.shape[-1] - real_dim
    inv_n = 1.0 / real_dim
    mean = jnp.sum(x, axis=-1, keepdims=True) * inv_n
    centered = x - mean
    # padded lanes contribute mean^2 each to sum(centered^2); subtract them out.
    var = (jnp.sum(centered * centered, axis=-1, keepdims=True)
           - n_pad * mean * mean) * inv_n
    return centered * jax.lax.rsqrt(var + eps) * gamma + beta


def encoder_tf_kernel(ids_ref, emb_ref, wqkv_ref, bqkv_ref, wo_ref,
                      w1_ref, b1_ref, w2_ref, vecs_ref, o_ref,
                      *, num_heads, hidden1, seq_len):
    b = pl.program_id(0)
    S = seq_len
    H1 = hidden1
    f32, bf16 = jnp.float32, jnp.bfloat16

    # --- embedding lookup: SMEM ids -> dynamic row gather, assembled in vregs ---
    rows = [emb_ref[pl.ds(ids_ref[b, s], 1), :] for s in range(S)]
    x = jnp.concatenate(rows, axis=0)                      # (S, H1p) f32, pad cols 0

    # --- fused QKV projection; each (matrix, head) pair owns a 128-lane slab ---
    qkv = jnp.dot(x.astype(bf16), wqkv_ref[...],
                  preferred_element_type=f32) + bqkv_ref[...]   # (S, 3*heads*LANE)

    # --- multi-head attention, statically unrolled per head (tile-aligned views) ---
    ctx_heads = []
    for h in range(num_heads):
        q_h = qkv[:, (0 * num_heads + h) * LANE:(0 * num_heads + h + 1) * LANE]
        k_h = qkv[:, (1 * num_heads + h) * LANE:(1 * num_heads + h + 1) * LANE]
        v_h = qkv[:, (2 * num_heads + h) * LANE:(2 * num_heads + h + 1) * LANE]
        # padded lanes of q/k/v are exactly zero -> dot over 128 lanes is exact.
        s_h = jax.lax.dot_general(q_h.astype(bf16), k_h.astype(bf16),
                                  (((1,), (1,)), ((), ())),
                                  preferred_element_type=f32)    # (S, S)
        s_h = s_h - jnp.max(s_h, axis=-1, keepdims=True)
        p_h = jnp.exp(s_h)
        p_h = p_h * pl.reciprocal(jnp.sum(p_h, axis=-1, keepdims=True), approx=True)
        ctx_heads.append(jnp.dot(p_h.astype(bf16), v_h.astype(bf16),
                                 preferred_element_type=f32))    # (S, LANE)
    ctx = jnp.concatenate(ctx_heads, axis=1)               # (S, num_heads*LANE)

    # --- output projection (W_o packed per head) + residual + LayerNorm ---
    attn = jnp.dot(ctx.astype(bf16), wo_ref[...],
                   preferred_element_type=f32) + vecs_ref[0:1, :]     # + bo
    h1 = _layer_norm_masked(x + attn, vecs_ref[2:3, :], vecs_ref[3:4, :], H1)

    # --- position-wise feed-forward + residual + LayerNorm ---
    ff = jnp.maximum(
        jnp.dot(h1.astype(bf16), w1_ref[...],
                preferred_element_type=f32) + b1_ref[...], 0.0)
    ff2 = jnp.dot(ff.astype(bf16), w2_ref[...],
                  preferred_element_type=f32) + vecs_ref[1:2, :]      # + b2
    out = _layer_norm_masked(h1 + ff2, vecs_ref[4:5, :], vecs_ref[5:6, :], H1)

    o_ref[...] = out.astype(o_ref.dtype)                   # lane-dense (S, 128) store


def prepare_params(params, num_heads):
    """One-time fuse / fold / zero-pad of PyTorch-layout params into lane-dense slabs."""
    f32, bf16 = jnp.float32, jnp.bfloat16
    emb = params["embedding"]
    V, H1 = emb.shape
    H2 = params["w1"].shape[1]
    dh = H1 // num_heads
    H1p, H2p = _round_up(H1, LANE), _round_up(H2, LANE)

    emb_p = jnp.zeros((V, H1p), f32).at[:, :H1].set(emb)

    # fold 1/sqrt(dh) into W_q / b_q
    scale = 1.0 / math.sqrt(dh)
    wq, bq = params["wq"] * scale, params["bq"] * scale

    # QKV: one 128-lane slab per (matrix m, head h); real cols 0..dh-1 of each slab.
    wqkv = jnp.zeros((H1p, 3 * num_heads * LANE), f32)
    bqkv = jnp.zeros((1, 3 * num_heads * LANE), f32)
    for m, (w, bvec) in enumerate([(wq, bq),
                                   (params["wk"], params["bk"]),
                                   (params["wv"], params["bv"])]):
        for h in range(num_heads):
            c0 = (m * num_heads + h) * LANE
            wqkv = wqkv.at[:H1, c0:c0 + dh].set(w[:, h * dh:(h + 1) * dh])
            bqkv = bqkv.at[:, c0:c0 + dh].set(bvec[:, h * dh:(h + 1) * dh])

    # W_o packed per head: rows [h*LANE, h*LANE+dh) hold wo[h*dh:(h+1)*dh, :].
    wo_p = jnp.zeros((num_heads * LANE, H1p), f32)
    for h in range(num_heads):
        wo_p = wo_p.at[h * LANE:h * LANE + dh, :H1].set(
            params["wo"][h * dh:(h + 1) * dh, :])

    w1_p = jnp.zeros((H1p, H2p), f32).at[:H1, :H2].set(params["w1"])
    b1_p = jnp.zeros((1, H2p), f32).at[:, :H2].set(params["b1"])
    w2_p = jnp.zeros((H2p, H1p), f32).at[:H2, :H1].set(params["w2"])

    # small vectors packed into one (8, H1p) slab: bo, b2, g1, be1, g2, be2, 0, 0
    vecs = jnp.zeros((8, H1p), f32)
    for r, name in enumerate(["bo", "b2", "g1", "be1", "g2", "be2"]):
        vecs = vecs.at[r, :H1].set(params[name][0])

    return {
        "emb": emb_p,
        "wqkv": wqkv.astype(bf16), "bqkv": bqkv,
        "wo": wo_p.astype(bf16),
        "w1": w1_p.astype(bf16), "b1": b1_p,
        "w2": w2_p.astype(bf16),
        "vecs": vecs,
        "hidden1": H1, "hidden2": H2,
        "hidden1_pad": H1p, "hidden2_pad": H2p,
    }


def encoder_tf_forward_batched(ids_b, prepared, *, num_heads):
    """ids_b: (B, S) int32 token ids. Returns (B, S, hidden_size1) float32."""
    H1, H1p, H2p = prepared["hidden1"], prepared["hidden1_pad"], prepared["hidden2_pad"]
    B, S = ids_b.shape

    weight_names = ["emb", "wqkv", "bqkv", "wo", "w1", "b1", "w2", "vecs"]
    weights = [prepared[n] for n in weight_names]

    def const_spec(arr):
        # full-array block, constant block index -> stays VMEM-resident across grid
        return pl.BlockSpec(arr.shape, lambda b, ids: (0, 0))

    grid_spec = pltpu.PrefetchScalarGridSpec(
        num_scalar_prefetch=1,
        grid=(B,),
        in_specs=[const_spec(a) for a in weights],
        out_specs=pl.BlockSpec((S, H1p), lambda b, ids: (b, 0)),
    )

    Cqkv = 3 * num_heads * LANE
    flops_per_seq = (2 * S * H1p * Cqkv                      # fused QKV
                     + num_heads * 4 * S * S * LANE          # scores + ctx
                     + 2 * S * num_heads * LANE * H1p        # output projection
                     + 2 * S * H1p * H2p + 2 * S * H2p * H1p)  # feed-forward
    cost = pl.CostEstimate(
        flops=int(B * flops_per_seq),
        transcendentals=int(B * (num_heads * S * S + 4 * S)),
        bytes_accessed=int(sum(int(a.nbytes) for a in weights)
                           + B * S * (4 + 4 * H1p + 4 * H1p)),
    )

    out_padded = pl.pallas_call(
        functools.partial(encoder_tf_kernel, num_heads=num_heads,
                          hidden1=H1, seq_len=S),
        out_shape=jax.ShapeDtypeStruct((B * S, H1p), jnp.float32),
        grid_spec=grid_spec,
        compiler_params=pltpu.CompilerParams(
            dimension_semantics=("parallel",)),   # batch axis -> both TCs on v7x
        cost_estimate=cost,
    )(ids_b.astype(jnp.int32), *weights)

    return out_padded.reshape(B, S, H1p)[:, :, :H1]


def encoder_tf_forward(ids, prepared, *, num_heads):
    """ids: (S, 1) int32 token indices (PyTorch EncoderTF input). Returns (S, H1)."""
    ids_b = ids.reshape(1, -1)                   # == input.transpose(0,1)
    return encoder_tf_forward_batched(ids_b, prepared, num_heads=num_heads)[0]


def init_params(key, input_size, hidden_size1, hidden_size2):
    keys = jax.random.split(key, 8)
    scale = 0.02
    f32 = jnp.float32
    return {
        "embedding": scale * jax.random.normal(keys[0], (input_size, hidden_size1), f32),
        "wq": scale * jax.random.normal(keys[1], (hidden_size1, hidden_size1), f32),
        "bq": jnp.zeros((1, hidden_size1), f32),
        "wk": scale * jax.random.normal(keys[2], (hidden_size1, hidden_size1), f32),
        "bk": jnp.zeros((1, hidden_size1), f32),
        "wv": scale * jax.random.normal(keys[3], (hidden_size1, hidden_size1), f32),
        "bv": jnp.zeros((1, hidden_size1), f32),
        "wo": scale * jax.random.normal(keys[4], (hidden_size1, hidden_size1), f32),
        "bo": jnp.zeros((1, hidden_size1), f32),
        "w1": scale * jax.random.normal(keys[5], (hidden_size1, hidden_size2), f32),
        "b1": jnp.zeros((1, hidden_size2), f32),
        "w2": scale * jax.random.normal(keys[6], (hidden_size2, hidden_size1), f32),
        "b2": jnp.zeros((1, hidden_size1), f32),
        "g1": jnp.ones((1, hidden_size1), f32),
        "be1": jnp.zeros((1, hidden_size1), f32),
        "g2": jnp.ones((1, hidden_size1), f32),
        "be2": jnp.zeros((1, hidden_size1), f32),
    }


def encoder_tf_reference(ids_flat, params, *, num_heads):
    """Pure-JAX f32 reference of the same forward pass (for validation)."""
    x = params["embedding"][ids_flat.reshape(-1)]
    S, H1 = x.shape
    dh = H1 // num_heads
    q = x @ params["wq"] + params["bq"]
    k = x @ params["wk"] + params["bk"]
    v = x @ params["wv"] + params["bv"]
    qh = q.reshape(S, num_heads, dh)
    kh = k.reshape(S, num_heads, dh)
    vh = v.reshape(S, num_heads, dh)
    s = jnp.einsum('qhd,khd->hqk', qh, kh) / math.sqrt(dh)
    p = jax.nn.softmax(s, axis=-1)
    ctx = jnp.einsum('hqk,khd->qhd', p, vh).reshape(S, H1)
    attn = ctx @ params["wo"] + params["bo"]

    def ln(y, g, b, eps=1e-5):
        mu = y.mean(-1, keepdims=True)
        var = ((y - mu) ** 2).mean(-1, keepdims=True)
        return (y - mu) / jnp.sqrt(var + eps) * g + b

    h1 = ln(x + attn, params["g1"], params["be1"])
    ff = jax.nn.relu(h1 @ params["w1"] + params["b1"])
    ff2 = ff @ params["w2"] + params["b2"]
    return ln(h1 + ff2, params["g2"], params["be2"])


if __name__ == "__main__":
    # EncoderTF(input_size=50, hidden_size1=32, hidden_size2=64, num_heads=4, n_layers=1)
    input_size = 50
    hidden_size1 = 32
    hidden_size2 = 64
    num_heads = 4
    seq_len = 8

    key = jax.random.PRNGKey(0)
    k_ids, k_params, k_batch = jax.random.split(key, 3)
    params = init_params(k_params, input_size, hidden_size1, hidden_size2)
    prepared = prepare_params(params, num_heads)

    # --- single sequence, matching the PyTorch module input: LongTensor (S, 1) ---
    ids = jax.random.randint(k_ids, (seq_len, 1), 0, input_size, dtype=jnp.int32)
    out = encoder_tf_forward(ids, prepared, num_heads=num_heads)
    out = jax.block_until_ready(out)
    assert out.shape == (seq_len, hidden_size1)
    ref = encoder_tf_reference(ids.reshape(-1), params, num_heads=num_heads)
    assert jnp.allclose(out, ref, atol=1e-2, rtol=1e-2), "kernel/reference mismatch"

    # --- batched path (grid over sequences, parallel across TensorCores) ---
    B = 3
    ids_b = jax.random.randint(k_batch, (B, seq_len), 0, input_size, dtype=jnp.int32)
    out_b = encoder_tf_forward_batched(ids_b, prepared, num_heads=num_heads)
    out_b = jax.block_until_ready(out_b)
    assert out_b.shape == (B, seq_len, hidden_size1)
    for bi in range(B):
        ref_b = encoder_tf_reference(ids_b[bi], params, num_heads=num_heads)
        assert jnp.allclose(out_b[bi], ref_b, atol=1e-2, rtol=1e-2), \
            f"batched kernel/reference mismatch at b={bi}"

    print("KERNEL_OK")
</pallas_src>

<mosaic_0001>
module attributes {stable_mosaic.version = 11 : i64} {
  func.func @encoder_tf_kernel(%arg0: i32, %arg1: memref<1x8xi32, #tpu.memory_space<smem>>, %arg2: memref<50x128xf32, #tpu.memory_space<vmem>>, %arg3: memref<128x1536xbf16, #tpu.memory_space<vmem>>, %arg4: memref<1x1536xf32, #tpu.memory_space<vmem>>, %arg5: memref<512x128xbf16, #tpu.memory_space<vmem>>, %arg6: memref<128x128xbf16, #tpu.memory_space<vmem>>, %arg7: memref<1x128xf32, #tpu.memory_space<vmem>>, %arg8: memref<128x128xbf16, #tpu.memory_space<vmem>>, %arg9: memref<8x128xf32, #tpu.memory_space<vmem>>, %arg10: memref<8x128xf32, #tpu.memory_space<vmem>>) attributes {dimension_semantics = [#tpu.dimension_semantics<parallel>], iteration_bounds = array<i64: 1>, scalar_prefetch = 1 : i64, scratch_operands = 0 : i64, tpu.core_type = #tpu.core_type<tc>, window_params = [{pipeline_mode = #tpu.pipeline_mode<synchronous>, transform_indices = @transform_0, window_bounds = array<i64: 50, 128>}, {pipeline_mode = #tpu.pipeline_mode<synchronous>, transform_indices = @transform_1, window_bounds = array<i64: 128, 1536>}, {pipeline_mode = #tpu.pipeline_mode<synchronous>, transform_indices = @transform_2, window_bounds = array<i64: 1, 1536>}, {pipeline_mode = #tpu.pipeline_mode<synchronous>, transform_indices = @transform_3, window_bounds = array<i64: 512, 128>}, {pipeline_mode = #tpu.pipeline_mode<synchronous>, transform_indices = @transform_4, window_bounds = array<i64: 128, 128>}, {pipeline_mode = #tpu.pipeline_mode<synchronous>, transform_indices = @transform_5, window_bounds = array<i64: 1, 128>}, {pipeline_mode = #tpu.pipeline_mode<synchronous>, transform_indices = @transform_6, window_bounds = array<i64: 128, 128>}, {pipeline_mode = #tpu.pipeline_mode<synchronous>, transform_indices = @transform_7, window_bounds = array<i64: 8, 128>}, {transform_indices = @transform_8, window_bounds = array<i64: 8, 128>}]} {
    %0 = arith.index_cast %arg0 : i32 to index
    %c0 = arith.constant 0 : index
    %1 = memref.load %arg1[%0, %c0] : memref<1x8xi32, #tpu.memory_space<smem>>
    %2 = arith.index_cast %1 : i32 to index
    %c0_0 = arith.constant 0 : index
    %3 = vector.load %arg2[%2, %c0_0] : memref<50x128xf32, #tpu.memory_space<vmem>>, vector<1x128xf32>
    %4 = arith.index_cast %arg0 : i32 to index
    %c1 = arith.constant 1 : index
    %5 = memref.load %arg1[%4, %c1] : memref<1x8xi32, #tpu.memory_space<smem>>
    %6 = arith.index_cast %5 : i32 to index
    %c0_1 = arith.constant 0 : index
    %7 = vector.load %arg2[%6, %c0_1] : memref<50x128xf32, #tpu.memory_space<vmem>>, vector<1x128xf32>
    %8 = arith.index_cast %arg0 : i32 to index
    %c2 = arith.constant 2 : index
    %9 = memref.load %arg1[%8, %c2] : memref<1x8xi32, #tpu.memory_space<smem>>
    %10 = arith.index_cast %9 : i32 to index
    %c0_2 = arith.constant 0 : index
    %11 = vector.load %arg2[%10, %c0_2] : memref<50x128xf32, #tpu.memory_space<vmem>>, vector<1x128xf32>
    %12 = arith.index_cast %arg0 : i32 to index
    %c3 = arith.constant 3 : index
    %13 = memref.load %arg1[%12, %c3] : memref<1x8xi32, #tpu.memory_space<smem>>
    %14 = arith.index_cast %13 : i32 to index
    %c0_3 = arith.constant 0 : index
    %15 = vector.load %arg2[%14, %c0_3] : memref<50x128xf32, #tpu.memory_space<vmem>>, vector<1x128xf32>
    %16 = arith.index_cast %arg0 : i32 to index
    %c4 = arith.constant 4 : index
    %17 = memref.load %arg1[%16, %c4] : memref<1x8xi32, #tpu.memory_space<smem>>
    %18 = arith.index_cast %17 : i32 to index
    %c0_4 = arith.constant 0 : index
    %19 = vector.load %arg2[%18, %c0_4] : memref<50x128xf32, #tpu.memory_space<vmem>>, vector<1x128xf32>
    %20 = arith.index_cast %arg0 : i32 to index
    %c5 = arith.constant 5 : index
    %21 = memref.load %arg1[%20, %c5] : memref<1x8xi32, #tpu.memory_space<smem>>
    %22 = arith.index_cast %21 : i32 to index
    %c0_5 = arith.constant 0 : index
    %23 = vector.load %arg2[%22, %c0_5] : memref<50x128xf32, #tpu.memory_space<vmem>>, vector<1x128xf32>
    %24 = arith.index_cast %arg0 : i32 to index
    %c6 = arith.constant 6 : index
    %25 = memref.load %arg1[%24, %c6] : memref<1x8xi32, #tpu.memory_space<smem>>
    %26 = arith.index_cast %25 : i32 to index
    %c0_6 = arith.constant 0 : index
    %27 = vector.load %arg2[%26, %c0_6] : memref<50x128xf32, #tpu.memory_space<vmem>>, vector<1x128xf32>
    %28 = arith.index_cast %arg0 : i32 to index
    %c7 = arith.constant 7 : index
    %29 = memref.load %arg1[%28, %c7] : memref<1x8xi32, #tpu.memory_space<smem>>
    %30 = arith.index_cast %29 : i32 to index
    %c0_7 = arith.constant 0 : index
    %31 = vector.load %arg2[%30, %c0_7] : memref<50x128xf32, #tpu.memory_space<vmem>>, vector<1x128xf32>
    %32 = tpu.concatenate %3, %7, %11, %15, %19, %23, %27, %31 in 0 : vector<1x128xf32>, vector<1x128xf32>, vector<1x128xf32>, vector<1x128xf32>, vector<1x128xf32>, vector<1x128xf32>, vector<1x128xf32>, vector<1x128xf32> -> vector<8x128xf32>
    %33 = arith.truncf %32 : vector<8x128xf32> to vector<8x128xbf16>
    %c0_8 = arith.constant 0 : index
    %c0_9 = arith.constant 0 : index
    %34 = vector.load %arg3[%c0_8, %c0_9] : memref<128x1536xbf16, #tpu.memory_space<vmem>>, vector<128x1536xbf16>
    %cst = arith.constant dense<0.000000e+00> : vector<8x1536xf32>
    %35 = tpu.matmul %33, %34, %cst {dimension_numbers = #tpu.dot_dimension_numbers<[1], [0], [0], [1], [0, 0, 1, 1], [], []>} : vector<8x128xbf16>, vector<128x1536xbf16>, vector<8x1536xf32> -> vector<8x1536xf32>
    %c0_10 = arith.constant 0 : index
    %c0_11 = arith.constant 0 : index
    %36 = vector.load %arg4[%c0_10, %c0_11] : memref<1x1536xf32, #tpu.memory_space<vmem>>, vector<1x1536xf32>
    %37 = vector.broadcast %36 : vector<1x1536xf32> to vector<8x1536xf32>
    %38 = arith.addf %35, %37 : vector<8x1536xf32>
    %39 = vector.extract_strided_slice %38 {offsets = [0, 0], sizes = [8, 128], strides = [1, 1]} : vector<8x1536xf32> to vector<8x128xf32>
    %40 = vector.extract_strided_slice %38 {offsets = [0, 512], sizes = [8, 128], strides = [1, 1]} : vector<8x1536xf32> to vector<8x128xf32>
    %41 = vector.extract_strided_slice %38 {offsets = [0, 1024], sizes = [8, 128], strides = [1, 1]} : vector<8x1536xf32> to vector<8x128xf32>
    %42 = arith.truncf %39 : vector<8x128xf32> to vector<8x128xbf16>
    %43 = arith.truncf %40 : vector<8x128xf32> to vector<8x128xbf16>
    %cst_12 = arith.constant dense<0.000000e+00> : vector<8x8xf32>
    %44 = tpu.matmul %42, %43, %cst_12 {dimension_numbers = #tpu.dot_dimension_numbers<[1], [1], [0], [0], [0, 0, 1, 0], [], []>} : vector<8x128xbf16>, vector<8x128xbf16>, vector<8x8xf32> -> vector<8x8xf32>
    %cst_13 = arith.constant dense<0xFF800000> : vector<8xf32>
    %45 = vector.multi_reduction <maximumf>, %44, %cst_13 [1] : vector<8x8xf32> to vector<8xf32>
    %46 = vector.shape_cast %45 : vector<8xf32> to vector<8x1xf32>
    %47 = vector.broadcast %46 : vector<8x1xf32> to vector<8x8xf32>
    %48 = arith.subf %44, %47 : vector<8x8xf32>
    %49 = math.exp %48 : vector<8x8xf32>
    %cst_14 = arith.constant dense<0.000000e+00> : vector<8xf32>
    %50 = vector.multi_reduction <add>, %49, %cst_14 [1] : vector<8x8xf32> to vector<8xf32>
    %51 = vector.shape_cast %50 : vector<8xf32> to vector<8x1xf32>
    %52 = tpu.reciprocal %51 {approx = true} : vector<8x1xf32> -> vector<8x1xf32>
    %53 = vector.broadcast %52 : vector<8x1xf32> to vector<8x8xf32>
    %54 = arith.mulf %49, %53 : vector<8x8xf32>
    %55 = arith.truncf %54 : vector<8x8xf32> to vector<8x8xbf16>
    %56 = arith.truncf %41 : vector<8x128xf32> to vector<8x128xbf16>
    %cst_15 = arith.constant dense<0.000000e+00> : vector<8x128xf32>
    %57 = tpu.matmul %55, %56, %cst_15 {dimension_numbers = #tpu.dot_dimension_numbers<[1], [0], [0], [1], [0, 0, 1, 1], [], []>} : vector<8x8xbf16>, vector<8x128xbf16>, vector<8x128xf32> -> vector<8x128xf32>
    %58 = vector.extract_strided_slice %38 {offsets = [0, 128], sizes = [8, 128], strides = [1, 1]} : vector<8x1536xf32> to vector<8x128xf32>
    %59 = vector.extract_strided_slice %38 {offsets = [0, 640], sizes = [8, 128], strides = [1, 1]} : vector<8x1536xf32> to vector<8x128xf32>
    %60 = vector.extract_strided_slice %38 {offsets = [0, 1152], sizes = [8, 128], strides = [1, 1]} : vector<8x1536xf32> to vector<8x128xf32>
    %61 = arith.truncf %58 : vector<8x128xf32> to vector<8x128xbf16>
    %62 = arith.truncf %59 : vector<8x128xf32> to vector<8x128xbf16>
    %cst_16 = arith.constant dense<0.000000e+00> : vector<8x8xf32>
    %63 = tpu.matmul %61, %62, %cst_16 {dimension_numbers = #tpu.dot_dimension_numbers<[1], [1], [0], [0], [0, 0, 1, 0], [], []>} : vector<8x128xbf16>, vector<8x128xbf16>, vector<8x8xf32> -> vector<8x8xf32>
    %cst_17 = arith.constant dense<0xFF800000> : vector<8xf32>
    %64 = vector.multi_reduction <maximumf>, %63, %cst_17 [1] : vector<8x8xf32> to vector<8xf32>
    %65 = vector.shape_cast %64 : vector<8xf32> to vector<8x1xf32>
    %66 = vector.broadcast %65 : vector<8x1xf32> to vector<8x8xf32>
    %67 = arith.subf %63, %66 : vector<8x8xf32>
    %68 = math.exp %67 : vector<8x8xf32>
    %cst_18 = arith.constant dense<0.000000e+00> : vector<8xf32>
    %69 = vector.multi_reduction <add>, %68, %cst_18 [1] : vector<8x8xf32> to vector<8xf32>
    %70 = vector.shape_cast %69 : vector<8xf32> to vector<8x1xf32>
    %71 = tpu.reciprocal %70 {approx = true} : vector<8x1xf32> -> vector<8x1xf32>
    %72 = vector.broadcast %71 : vector<8x1xf32> to vector<8x8xf32>
    %73 = arith.mulf %68, %72 : vector<8x8xf32>
    %74 = arith.truncf %73 : vector<8x8xf32> to vector<8x8xbf16>
    %75 = arith.truncf %60 : vector<8x128xf32> to vector<8x128xbf16>
    %cst_19 = arith.constant dense<0.000000e+00> : vector<8x128xf32>
    %76 = tpu.matmul %74, %75, %cst_19 {dimension_numbers = #tpu.dot_dimension_numbers<[1], [0], [0], [1], [0, 0, 1, 1], [], []>} : vector<8x8xbf16>, vector<8x128xbf16>, vector<8x128xf32> -> vector<8x128xf32>
    %77 = vector.extract_strided_slice %38 {offsets = [0, 256], sizes = [8, 128], strides = [1, 1]} : vector<8x1536xf32> to vector<8x128xf32>
    %78 = vector.extract_strided_slice %38 {offsets = [0, 768], sizes = [8, 128], strides = [1, 1]} : vector<8x1536xf32> to vector<8x128xf32>
    %79 = vector.extract_strided_slice %38 {offsets = [0, 1280], sizes = [8, 128], strides = [1, 1]} : vector<8x1536xf32> to vector<8x128xf32>
    %80 = arith.truncf %77 : vector<8x128xf32> to vector<8x128xbf16>
    %81 = arith.truncf %78 : vector<8x128xf32> to vector<8x128xbf16>
    %cst_20 = arith.constant dense<0.000000e+00> : vector<8x8xf32>
    %82 = tpu.matmul %80, %81, %cst_20 {dimension_numbers = #tpu.dot_dimension_numbers<[1], [1], [0], [0], [0, 0, 1, 0], [], []>} : vector<8x128xbf16>, vector<8x128xbf16>, vector<8x8xf32> -> vector<8x8xf32>
    %cst_21 = arith.constant dense<0xFF800000> : vector<8xf32>
    %83 = vector.multi_reduction <maximumf>, %82, %cst_21 [1] : vector<8x8xf32> to vector<8xf32>
    %84 = vector.shape_cast %83 : vector<8xf32> to vector<8x1xf32>
    %85 = vector.broadcast %84 : vector<8x1xf32> to vector<8x8xf32>
    %86 = arith.subf %82, %85 : vector<8x8xf32>
    %87 = math.exp %86 : vector<8x8xf32>
    %cst_22 = arith.constant dense<0.000000e+00> : vector<8xf32>
    %88 = vector.multi_reduction <add>, %87, %cst_22 [1] : vector<8x8xf32> to vector<8xf32>
    %89 = vector.shape_cast %88 : vector<8xf32> to vector<8x1xf32>
    %90 = tpu.reciprocal %89 {approx = true} : vector<8x1xf32> -> vector<8x1xf32>
    %91 = vector.broadcast %90 : vector<8x1xf32> to vector<8x8xf32>
    %92 = arith.mulf %87, %91 : vector<8x8xf32>
    %93 = arith.truncf %92 : vector<8x8xf32> to vector<8x8xbf16>
    %94 = arith.truncf %79 : vector<8x128xf32> to vector<8x128xbf16>
    %cst_23 = arith.constant dense<0.000000e+00> : vector<8x128xf32>
    %95 = tpu.matmul %93, %94, %cst_23 {dimension_numbers = #tpu.dot_dimension_numbers<[1], [0], [0], [1], [0, 0, 1, 1], [], []>} : vector<8x8xbf16>, vector<8x128xbf16>, vector<8x128xf32> -> vector<8x128xf32>
    %96 = vector.extract_strided_slice %38 {offsets = [0, 384], sizes = [8, 128], strides = [1, 1]} : vector<8x1536xf32> to vector<8x128xf32>
    %97 = vector.extract_strided_slice %38 {offsets = [0, 896], sizes = [8, 128], strides = [1, 1]} : vector<8x1536xf32> to vector<8x128xf32>
    %98 = vector.extract_strided_slice %38 {offsets = [0, 1408], sizes = [8, 128], strides = [1, 1]} : vector<8x1536xf32> to vector<8x128xf32>
    %99 = arith.truncf %96 : vector<8x128xf32> to vector<8x128xbf16>
    %100 = arith.truncf %97 : vector<8x128xf32> to vector<8x128xbf16>
    %cst_24 = arith.constant dense<0.000000e+00> : vector<8x8xf32>
    %101 = tpu.matmul %99, %100, %cst_24 {dimension_numbers = #tpu.dot_dimension_numbers<[1], [1], [0], [0], [0, 0, 1, 0], [], []>} : vector<8x128xbf16>, vector<8x128xbf16>, vector<8x8xf32> -> vector<8x8xf32>
    %cst_25 = arith.constant dense<0xFF800000> : vector<8xf32>
    %102 = vector.multi_reduction <maximumf>, %101, %cst_25 [1] : vector<8x8xf32> to vector<8xf32>
    %103 = vector.shape_cast %102 : vector<8xf32> to vector<8x1xf32>
    %104 = vector.broadcast %103 : vector<8x1xf32> to vector<8x8xf32>
    %105 = arith.subf %101, %104 : vector<8x8xf32>
    %106 = math.exp %105 : vector<8x8xf32>
    %cst_26 = arith.constant dense<0.000000e+00> : vector<8xf32>
    %107 = vector.multi_reduction <add>, %106, %cst_26 [1] : vector<8x8xf32> to vector<8xf32>
    %108 = vector.shape_cast %107 : vector<8xf32> to vector<8x1xf32>
    %109 = tpu.reciprocal %108 {approx = true} : vector<8x1xf32> -> vector<8x1xf32>
    %110 = vector.broadcast %109 : vector<8x1xf32> to vector<8x8xf32>
    %111 = arith.mulf %106, %110 : vector<8x8xf32>
    %112 = arith.truncf %111 : vector<8x8xf32> to vector<8x8xbf16>
    %113 = arith.truncf %98 : vector<8x128xf32> to vector<8x128xbf16>
    %cst_27 = arith.constant dense<0.000000e+00> : vector<8x128xf32>
    %114 = tpu.matmul %112, %113, %cst_27 {dimension_numbers = #tpu.dot_dimension_numbers<[1], [0], [0], [1], [0, 0, 1, 1], [], []>} : vector<8x8xbf16>, vector<8x128xbf16>, vector<8x128xf32> -> vector<8x128xf32>
    %115 = tpu.concatenate %57, %76, %95, %114 in 1 : vector<8x128xf32>, vector<8x128xf32>, vector<8x128xf32>, vector<8x128xf32> -> vector<8x512xf32>
    %116 = arith.truncf %115 : vector<8x512xf32> to vector<8x512xbf16>
    %c0_28 = arith.constant 0 : index
    %c0_29 = arith.constant 0 : index
    %117 = vector.load %arg5[%c0_28, %c0_29] : memref<512x128xbf16, #tpu.memory_space<vmem>>, vector<512x128xbf16>
    %cst_30 = arith.constant dense<0.000000e+00> : vector<8x128xf32>
    %118 = tpu.matmul %116, %117, %cst_30 {dimension_numbers = #tpu.dot_dimension_numbers<[1], [0], [0], [1], [0, 0, 1, 1], [], []>} : vector<8x512xbf16>, vector<512x128xbf16>, vector<8x128xf32> -> vector<8x128xf32>
    %c0_31 = arith.constant 0 : index
    %c0_32 = arith.constant 0 : index
    %119 = vector.load %arg9[%c0_31, %c0_32] : memref<8x128xf32, #tpu.memory_space<vmem>>, vector<1x128xf32>
    %120 = vector.broadcast %119 : vector<1x128xf32> to vector<8x128xf32>
    %121 = arith.addf %118, %120 : vector<8x128xf32>
    %122 = arith.addf %32, %121 : vector<8x128xf32>
    %c2_33 = arith.constant 2 : index
    %c0_34 = arith.constant 0 : index
    %123 = vector.load %arg9[%c2_33, %c0_34] : memref<8x128xf32, #tpu.memory_space<vmem>>, vector<1x128xf32>
    %c3_35 = arith.constant 3 : index
    %c0_36 = arith.constant 0 : index
    %124 = vector.load %arg9[%c3_35, %c0_36] : memref<8x128xf32, #tpu.memory_space<vmem>>, vector<1x128xf32>
    %cst_37 = arith.constant dense<0.000000e+00> : vector<8xf32>
    %125 = vector.multi_reduction <add>, %122, %cst_37 [1] : vector<8x128xf32> to vector<8xf32>
    %126 = vector.shape_cast %125 : vector<8xf32> to vector<8x1xf32>
    %cst_38 = arith.constant 3.125000e-02 : f32
    %127 = vector.broadcast %cst_38 : f32 to vector<8x1xf32>
    %128 = arith.mulf %126, %127 : vector<8x1xf32>
    %129 = vector.broadcast %128 : vector<8x1xf32> to vector<8x128xf32>
    %130 = arith.subf %122, %129 : vector<8x128xf32>
    %131 = arith.mulf %130, %130 : vector<8x128xf32>
    %cst_39 = arith.constant dense<0.000000e+00> : vector<8xf32>
    %132 = vector.multi_reduction <add>, %131, %cst_39 [1] : vector<8x128xf32> to vector<8xf32>
    %133 = vector.shape_cast %132 : vector<8xf32> to vector<8x1xf32>
    %cst_40 = arith.constant 9.600000e+01 : f32
    %134 = vector.broadcast %cst_40 : f32 to vector<8x1xf32>
    %135 = arith.mulf %134, %128 : vector<8x1xf32>
    %136 = arith.mulf %135, %128 : vector<8x1xf32>
    %137 = arith.subf %133, %136 : vector<8x1xf32>
    %cst_41 = arith.constant 3.125000e-02 : f32
    %138 = vector.broadcast %cst_41 : f32 to vector<8x1xf32>
    %139 = arith.mulf %137, %138 : vector<8x1xf32>
    %cst_42 = arith.constant 9.99999974E-6 : f32
    %140 = vector.broadcast %cst_42 : f32 to vector<8x1xf32>
    %141 = arith.addf %139, %140 : vector<8x1xf32>
    %142 = math.rsqrt %141 : vector<8x1xf32>
    %143 = vector.broadcast %142 : vector<8x1xf32> to vector<8x128xf32>
    %144 = arith.mulf %130, %143 : vector<8x128xf32>
    %145 = vector.broadcast %123 : vector<1x128xf32> to vector<8x128xf32>
    %146 = arith.mulf %144, %145 : vector<8x128xf32>
    %147 = vector.broadcast %124 : vector<1x128xf32> to vector<8x128xf32>
    %148 = arith.addf %146, %147 : vector<8x128xf32>
    %149 = arith.truncf %148 : vector<8x128xf32> to vector<8x128xbf16>
    %c0_43 = arith.constant 0 : index
    %c0_44 = arith.constant 0 : index
    %150 = vector.load %arg6[%c0_43, %c0_44] : memref<128x128xbf16, #tpu.memory_space<vmem>>, vector<128x128xbf16>
    %cst_45 = arith.constant dense<0.000000e+00> : vector<8x128xf32>
    %151 = tpu.matmul %149, %150, %cst_45 {dimension_numbers = #tpu.dot_dimension_numbers<[1], [0], [0], [1], [0, 0, 1, 1], [], []>} : vector<8x128xbf16>, vector<128x128xbf16>, vector<8x128xf32> -> vector<8x128xf32>
    %c0_46 = arith.constant 0 : index
    %c0_47 = arith.constant 0 : index
    %152 = vector.load %arg7[%c0_46, %c0_47] : memref<1x128xf32, #tpu.memory_space<vmem>>, vector<1x128xf32>
    %153 = vector.broadcast %152 : vector<1x128xf32> to vector<8x128xf32>
    %154 = arith.addf %151, %153 : vector<8x128xf32>
    %cst_48 = arith.constant 0.000000e+00 : f32
    %155 = vector.broadcast %cst_48 : f32 to vector<8x128xf32>
    %156 = arith.maximumf %154, %155 : vector<8x128xf32>
    %157 = arith.truncf %156 : vector<8x128xf32> to vector<8x128xbf16>
    %c0_49 = arith.constant 0 : index
    %c0_50 = arith.constant 0 : index
    %158 = vector.load %arg8[%c0_49, %c0_50] : memref<128x128xbf16, #tpu.memory_space<vmem>>, vector<128x128xbf16>
    %cst_51 = arith.constant dense<0.000000e+00> : vector<8x128xf32>
    %159 = tpu.matmul %157, %158, %cst_51 {dimension_numbers = #tpu.dot_dimension_numbers<[1], [0], [0], [1], [0, 0, 1, 1], [], []>} : vector<8x128xbf16>, vector<128x128xbf16>, vector<8x128xf32> -> vector<8x128xf32>
    %c1_52 = arith.constant 1 : index
    %c0_53 = arith.constant 0 : index
    %160 = vector.load %arg9[%c1_52, %c0_53] : memref<8x128xf32, #tpu.memory_space<vmem>>, vector<1x128xf32>
    %161 = vector.broadcast %160 : vector<1x128xf32> to vector<8x128xf32>
    %162 = arith.addf %159, %161 : vector<8x128xf32>
    %163 = arith.addf %148, %162 : vector<8x128xf32>
    %c4_54 = arith.constant 4 : index
    %c0_55 = arith.constant 0 : index
    %164 = vector.load %arg9[%c4_54, %c0_55] : memref<8x128xf32, #tpu.memory_space<vmem>>, vector<1x128xf32>
    %c5_56 = arith.constant 5 : index
    %c0_57 = arith.constant 0 : index
    %165 = vector.load %arg9[%c5_56, %c0_57] : memref<8x128xf32, #tpu.memory_space<vmem>>, vector<1x128xf32>
    %cst_58 = arith.constant dense<0.000000e+00> : vector<8xf32>
    %166 = vector.multi_reduction <add>, %163, %cst_58 [1] : vector<8x128xf32> to vector<8xf32>
    %167 = vector.shape_cast %166 : vector<8xf32> to vector<8x1xf32>
    %cst_59 = arith.constant 3.125000e-02 : f32
    %168 = vector.broadcast %cst_59 : f32 to vector<8x1xf32>
    %169 = arith.mulf %167, %168 : vector<8x1xf32>
    %170 = vector.broadcast %169 : vector<8x1xf32> to vector<8x128xf32>
    %171 = arith.subf %163, %170 : vector<8x128xf32>
    %172 = arith.mulf %171, %171 : vector<8x128xf32>
    %cst_60 = arith.constant dense<0.000000e+00> : vector<8xf32>
    %173 = vector.multi_reduction <add>, %172, %cst_60 [1] : vector<8x128xf32> to vector<8xf32>
    %174 = vector.shape_cast %173 : vector<8xf32> to vector<8x1xf32>
    %cst_61 = arith.constant 9.600000e+01 : f32
    %175 = vector.broadcast %cst_61 : f32 to vector<8x1xf32>
    %176 = arith.mulf %175, %169 : vector<8x1xf32>
    %177 = arith.mulf %176, %169 : vector<8x1xf32>
    %178 = arith.subf %174, %177 : vector<8x1xf32>
    %cst_62 = arith.constant 3.125000e-02 : f32
    %179 = vector.broadcast %cst_62 : f32 to vector<8x1xf32>
    %180 = arith.mulf %178, %179 : vector<8x1xf32>
    %cst_63 = arith.constant 9.99999974E-6 : f32
    %181 = vector.broadcast %cst_63 : f32 to vector<8x1xf32>
    %182 = arith.addf %180, %181 : vector<8x1xf32>
    %183 = math.rsqrt %182 : vector<8x1xf32>
    %184 = vector.broadcast %183 : vector<8x1xf32> to vector<8x128xf32>
    %185 = arith.mulf %171, %184 : vector<8x128xf32>
    %186 = vector.broadcast %164 : vector<1x128xf32> to vector<8x128xf32>
    %187 = arith.mulf %185, %186 : vector<8x128xf32>
    %188 = vector.broadcast %165 : vector<1x128xf32> to vector<8x128xf32>
    %189 = arith.addf %187, %188 : vector<8x128xf32>
    %c0_64 = arith.constant 0 : index
    %c0_65 = arith.constant 0 : index
    %190 = vector.load %arg10[%c0_64, %c0_65] : memref<8x128xf32, #tpu.memory_space<vmem>>, vector<8x128xf32>
    tpu.vector_store %arg10[%c0_64, %c0_65], %189 {strides = array<i32>} : memref<8x128xf32, #tpu.memory_space<vmem>>, vector<8x128xf32>,
    return
  }
  func.func @transform_0(%arg0: i32, %arg1: memref<1x8xi32, #tpu.memory_space<smem>>) -> (i32, i32) {
    %c0_i32 = arith.constant 0 : i32
    %c0_i32_0 = arith.constant 0 : i32
    %c0_i32_1 = arith.constant 0 : i32
    return %c0_i32, %c0_i32_0 : i32, i32
  }
  func.func @transform_1(%arg0: i32, %arg1: memref<1x8xi32, #tpu.memory_space<smem>>) -> (i32, i32) {
    %c0_i32 = arith.constant 0 : i32
    %c0_i32_0 = arith.constant 0 : i32
    %c0_i32_1 = arith.constant 0 : i32
    return %c0_i32, %c0_i32_0 : i32, i32
  }
  func.func @transform_2(%arg0: i32, %arg1: memref<1x8xi32, #tpu.memory_space<smem>>) -> (i32, i32) {
    %c0_i32 = arith.constant 0 : i32
    %c0_i32_0 = arith.constant 0 : i32
    %c0_i32_1 = arith.constant 0 : i32
    return %c0_i32, %c0_i32_0 : i32, i32
  }
  func.func @transform_3(%arg0: i32, %arg1: memref<1x8xi32, #tpu.memory_space<smem>>) -> (i32, i32) {
    %c0_i32 = arith.constant 0 : i32
    %c0_i32_0 = arith.constant 0 : i32
    %c0_i32_1 = arith.constant 0 : i32
    return %c0_i32, %c0_i32_0 : i32, i32
  }
  func.func @transform_4(%arg0: i32, %arg1: memref<1x8xi32, #tpu.memory_space<smem>>) -> (i32, i32) {
    %c0_i32 = arith.constant 0 : i32
    %c0_i32_0 = arith.constant 0 : i32
    %c0_i32_1 = arith.constant 0 : i32
    return %c0_i32, %c0_i32_0 : i32, i32
  }
  func.func @transform_5(%arg0: i32, %arg1: memref<1x8xi32, #tpu.memory_space<smem>>) -> (i32, i32) {
    %c0_i32 = arith.constant 0 : i32
    %c0_i32_0 = arith.constant 0 : i32
    %c0_i32_1 = arith.constant 0 : i32
    return %c0_i32, %c0_i32_0 : i32, i32
  }
  func.func @transform_6(%arg0: i32, %arg1: memref<1x8xi32, #tpu.memory_space<smem>>) -> (i32, i32) {
    %c0_i32 = arith.constant 0 : i32
    %c0_i32_0 = arith.constant 0 : i32
    %c0_i32_1 = arith.constant 0 : i32
    return %c0_i32, %c0_i32_0 : i32, i32
  }
  func.func @transform_7(%arg0: i32, %arg1: memref<1x8xi32, #tpu.memory_space<smem>>) -> (i32, i32) {
    %c0_i32 = arith.constant 0 : i32
    %c0_i32_0 = arith.constant 0 : i32
    %c0_i32_1 = arith.constant 0 : i32
    return %c0_i32, %c0_i32_0 : i32, i32
  }
  func.func @transform_8(%arg0: i32, %arg1: memref<1x8xi32, #tpu.memory_space<smem>>) -> (i32, i32) {
    %c0_i32 = arith.constant 0 : i32
    %c0_i32_0 = arith.constant 0 : i32
    return %arg0, %c0_i32 : i32, i32
  }
}

</mosaic_0001>

<bundles_post_ra>
// kernel: tpu_custom_call.1
= control target key start
LH: loop header
LB: loop body
LE: loop exit
PB: predicated region body
PF: predicated region fallthrough
CT: control target
= control target key end

     0   :  { %s3196_s0 = inlined_call_operand.hbm [shape: s32[1,8], index: 0, kind: input, shape index: {}]   ;;  %s3197_s1 = inlined_call_operand.hbm [shape: f32[50,128], index: 1, kind: input, shape index: {}]   ;;  %s3198_s2 = inlined_call_operand.hbm [shape: bf16[128,1536], index: 2, kind: input, shape index: {}]   ;;  %s3199_s3 = inlined_call_operand.hbm [shape: f32[1,1536], index: 3, kind: input, shape index: {}]   ;;  %s3200_s4 = inlined_call_operand.hbm [shape: bf16[512,128], index: 4, kind: input, shape index: {}]   ;;  %s3201_s5 = inlined_call_operand.hbm [shape: bf16[128,128], index: 5, kind: input, shape index: {}]   ;;  %s3202_s6 = inlined_call_operand.vmem [shape: f32[1,128], index: 6, kind: input, shape index: {}]   ;;  %s3203_s7 = inlined_call_operand.hbm [shape: bf16[128,128], index: 7, kind: input, shape index: {}]   ;;  %s3204_s8 = inlined_call_operand.vmem [shape: f32[8,128], index: 8, kind: input, shape index: {}]   ;;  %s3205_s9 = inlined_call_operand.hbm [shape: f32[8,128], index: 9, kind: output, shape index: {}]  }
   0x1   :  { %s2681_s11 = scalar_lea.hbm %s3196_s0, 16 }
   0x2   :  { %p2682_p0 = scmp.ne.s32.totalorder %s3196_s0, %s2681_s11  ;;  %p2685_p1 = scmp.lt.u32.totalorder %s2681_s11, %s3196_s0 }
   0x4   :  { %p2687_p2 = pnand %p2685_p1, %p2682_p0 }
   0x6   :  { %2690 = shalt.err (!%p2687_p2)  }
   0x7   :  { %s2857_s16 = smov [#allocation3]  }
   0x8   :  { %15 = dma.hbm_to_smem %s3196_s0, 16, %s2857_s16, [#allocation2] }
   0x9   :  { %2845 = dma.done.wait [#allocation2], 16 }
   0xa   :  { %2846 = vsyncadd [#allocation2], 4294967280 }
   0xb   :  { %17 = sfence }
   0xc   :  { %18 = vsyncpa [#allocation5], 0 }
   0xd   :  { %19 = vsyncpa [#allocation8], 0 }
   0xe   :  { %20 = vsyncpa [#allocation11], 0 }
   0xf   :  { %21 = vsyncpa [#allocation14], 0 }
  0x10   :  { %22 = vsyncpa [#allocation6], 0  ;;  %s2858_s19 = smov [#allocation7]   ;;  %s2691_s23 = scalar_lea.hbm %s3198_s2, 12288 }
  0x11   :  { %s40_s20 = sshll.u32 %s2858_s19, 4  ;;  %p2692_p3 = scmp.ne.s32.totalorder %s3198_s2, %s2691_s23  ;;  %s41_s20 = int_to_ptr.vmem [resolvable:$true] %s40_s20 }
  0x12   :  { %p2695_p4 = scmp.lt.u32.totalorder %s2691_s23, %s3198_s2 }
  0x14   :  { %p2697_p5 = pnand %p2695_p4, %p2692_p3 }
  0x16   :  { %2700 = shalt.err (!%p2697_p5)
}
  0x17   :  { %s2701_s27 = scalar_lea.vmem %s41_s20, 12288  ;;  %p2706_p7 = scmp.lt.s32.totalorder %s41_s20, %s41_s20 }
  0x18   :  { %p2702_p6 = scmp.ne.s32.totalorder %s41_s20, %s2701_s27  ;;  %p2707_p8 = scmp.lt.s32.totalorder %s2701_s27, %s2701_s27 }
  0x1a   :  { %p2708_p9 = por %p2707_p8, %p2706_p7 }
  0x1c   :  { %p2709_p10 = pnand %p2708_p9, %p2702_p6 }
  0x1e   :  { %2712 = shalt.err (!%p2709_p10)
}
  0x1f   :  { %s2859_s28 = smov 768   ;;  %s2860_s29 = smov 48  }
  0x20   :  { %46 = dma.hbm_to_vmem [thread:$0]  %s3198_s2, 12288, %s41_s20, [#allocation8], %s2859_s28, %s2859_s28, %s2860_s29  }
  0x21   :  { %s2861_s11 = smov [#allocation10]   ;;  %s2713_s15 = scalar_lea.hbm %s3200_s4, 4096 }
  0x22   :  { %s62_s12 = sshll.u32 %s2861_s11, 4  ;;  %p2714_p11 = scmp.ne.s32.totalorder %s3200_s4, %s2713_s15  ;;  %s63_s12 = int_to_ptr.vmem [resolvable:$true] %s62_s12 }
  0x23   :  { %p2717_p12 = scmp.lt.u32.totalorder %s2713_s15, %s3200_s4 }
  0x25   :  { %p2719_p13 = pnand %p2717_p12, %p2714_p11 }
  0x27   :  { %2722 = shalt.err (!%p2719_p13)
}
  0x28   :  { %s2723_s21 = scalar_lea.vmem %s63_s12, 4096  ;;  %p2728_p1 = scmp.lt.s32.totalorder %s63_s12, %s63_s12 }
  0x29   :  { %p2724_p0 = scmp.ne.s32.totalorder %s63_s12, %s2723_s21  ;;  %p2729_p2 = scmp.lt.s32.totalorder %s2723_s21, %s2723_s21 }
  0x2b   :  { %p2730_p3 = por %p2729_p2, %p2728_p1 }
  0x2d   :  { %p2731_p4 = pnand %p2730_p3, %p2724_p0 }
  0x2f   :  { %2734 = shalt.err (!%p2731_p4)
}
  0x30   :  { %s2862_s2 = smov 64   ;;  %s2863_s20 = smov 4  }
  0x31   :  { %68 = dma.hbm_to_vmem [thread:$0]  %s3200_s4, 4096, %s63_s12, [#allocation11], %s2862_s2, %s2862_s2, %s2863_s20  }
  0x32   :  { %s2864_s24 = smov [#allocation4]   ;;  %s2735_s27 = scalar_lea.hbm %s3197_s1, 896 }
  0x33   :  { %s28_s25 = sshll.u32 %s2864_s24, 4  ;;  %p2736_p5 = scmp.ne.s32.totalorder %s3197_s1, %s2735_s27  ;;  %s29_s25 = int_to_ptr.vmem [resolvable:$true] %s28_s25 }
  0x34   :  { %p2739_p6 = scmp.lt.u32.totalorder %s2735_s27, %s3197_s1 }
  0x36   :  { %p2741_p7 = pnand %p2739_p6, %p2736_p5 }
  0x38   :  { %2744 = shalt.err (!%p2741_p7)
}
  0x39   :  { %s2745_s11 = scalar_lea.vmem %s29_s25, 896  ;;  %p2750_p9 = scmp.lt.s32.totalorder %s29_s25, %s29_s25 }
  0x3a   :  { %p2746_p8 = scmp.ne.s32.totalorder %s29_s25, %s2745_s11  ;;  %p2751_p10 = scmp.lt.s32.totalorder %s2745_s11, %s2745_s11 }
  0x3c   :  { %p2752_p11 = por %p2751_p10, %p2750_p9 }
  0x3e   :  { %p2753_p12 = pnand %p2752_p11, %p2746_p8 }
  0x40   :  { %2756 = shalt.err (!%p2753_p12)
}
  0x41   :  { %s2865_s4 = smov 128   ;;  %s2866_s12 = smov 8  }
  0x42   :  { %34 = dma.hbm_to_vmem [thread:$0]  %s3197_s1, 896, %s29_s25, [#allocation5], %s2865_s4, %s2865_s4, %s2866_s12  }
  0x43   :  { %s2867_s15 = smov [#allocation9]   ;;  %s2868_s17 = smov [#allocation12]  }
  0x44   :  { %s53_s16 = sshll.u32 %s2867_s15, 4  ;;  %s74_s18 = sshll.u32 %s2868_s17, 4  ;;  %s54_s16 = int_to_ptr.vmem [resolvable:$true] %s53_s16  ;;  %s75_s18 = int_to_ptr.vmem [resolvable:$true] %s74_s18 }
  0x45   :  { %s2757_s22 = scalar_lea.hbm %s3199_s3, 192 }
  0x46   :  { %p2758_p13 = scmp.ne.s32.totalorder %s3199_s3, %s2757_s22  ;;  %p2761_p0 = scmp.lt.u32.totalorder %s2757_s22, %s3199_s3 }
  0x48   :  { %p2763_p1 = pnand %p2761_p0, %p2758_p13 }
  0x4a   :  { %2766 = shalt.err (!%p2763_p1)
}
  0x4b   :  { %s2767_s1 = scalar_lea.vmem %s54_s16, 192  ;;  %p2772_p3 = scmp.lt.s32.totalorder %s54_s16, %s54_s16 }
  0x4c   :  { %p2768_p2 = scmp.ne.s32.totalorder %s54_s16, %s2767_s1  ;;  %p2773_p4 = scmp.lt.s32.totalorder %s2767_s1, %s2767_s1 }
  0x4e   :  { %p2774_p5 = por %p2773_p4, %p2772_p3 }
  0x50   :  { %p2775_p6 = pnand %p2774_p5, %p2768_p2 }
  0x52   :  { %2778 = shalt.err (!%p2775_p6)
}
  0x53   :  { %56 = dma.hbm_to_vmem [thread:$0]  %s3199_s3, 192, %s54_s16, [#allocation8]  }
  0x54   :  { %s2779_s30 = scalar_lea.hbm %s3201_s5, 1024 }
  0x55   :  { %p2780_p7 = scmp.ne.s32.totalorder %s3201_s5, %s2779_s30  ;;  %p2783_p8 = scmp.lt.u32.totalorder %s2779_s30, %s3201_s5 }
  0x57   :  { %p2785_p9 = pnand %p2783_p8, %p2780_p7 }
  0x59   :  { %2788 = shalt.err (!%p2785_p9)
}
  0x5a   :  { %s2789_s13 = scalar_lea.vmem %s75_s18, 1024  ;;  %p2794_p11 = scmp.lt.s32.totalorder %s75_s18, %s75_s18 }
  0x5b   :  { %p2790_p10 = scmp.ne.s32.totalorder %s75_s18, %s2789_s13  ;;  %p2795_p12 = scmp.lt.s32.totalorder %s2789_s13, %s2789_s13 }
  0x5d   :  { %p2796_p13 = por %p2795_p12, %p2794_p11 }
  0x5f   :  { %p2797_p0 = pnand %p2796_p13, %p2790_p10 }
  0x61   :  { %2800 = shalt.err (!%p2797_p0)
}
  0x62   :  { %80 = dma.hbm_to_vmem [thread:$0]  %s3201_s5, 1024, %s75_s18, [#allocation11], %s2862_s2, %s2862_s2, %s2863_s20  }
  0x63   :  { %s2869_s15 = smov [#allocation13]   ;;  %s2801_s21 = scalar_lea.hbm %s3203_s7, 1024 }
  0x64   :  { %s88_s16 = sshll.u32 %s2869_s15, 4  ;;  %p2802_p1 = scmp.ne.s32.totalorder %s3203_s7, %s2801_s21  ;;  %s89_s16 = int_to_ptr.vmem [resolvable:$true] %s88_s16 }
  0x65   :  { %p2805_p2 = scmp.lt.u32.totalorder %s2801_s21, %s3203_s7 }
  0x67   :  { %p2807_p3 = pnand %p2805_p2, %p2802_p1 }
  0x69   :  { %2810 = shalt.err (!%p2807_p3)
}
  0x6a   :  { %s2811_s26 = scalar_lea.vmem %s89_s16, 1024  ;;  %p2816_p5 = scmp.lt.s32.totalorder %s89_s16, %s89_s16 }
  0x6b   :  { %p2812_p4 = scmp.ne.s32.totalorder %s89_s16, %s2811_s26  ;;  %p2817_p6 = scmp.lt.s32.totalorder %s2811_s26, %s2811_s26 }
  0x6d   :  { %p2818_p7 = por %p2817_p6, %p2816_p5 }
  0x6f   :  { %p2819_p8 = pnand %p2818_p7, %p2812_p4 }
  0x71   :  { %2822 = shalt.err (!%p2819_p8)
}
  0x72   :  { %94 = dma.hbm_to_vmem [thread:$0]  %s3203_s7, 1024, %s89_s16, [#allocation14], %s2862_s2, %s2862_s2, %s2863_s20  }
  0x73   :  { %2847 = dma.done.wait [#allocation5], 896  }
  0x74   :  { %2848 = vsyncadd [#allocation5], 4294966400 }
  0x75   :  { %2849 = dma.done.wait [#allocation8], 12480  }
  0x76   :  { %2850 = vsyncadd [#allocation8], 4294954816 }
  0x77   :  { %2851 = dma.done.wait [#allocation11], 5120  }
  0x78   :  { %2852 = vsyncadd [#allocation11], 4294962176 }
  0x79   :  { %2853 = dma.done.wait [#allocation14], 1024  }
  0x7a   :  { %2854 = vsyncadd [#allocation14], 4294966272  ;;  %v2870_v0 = vmov 0   ;;  %v2469_v1 = vld [vmem:[#allocation7 + $0x4] ss:$48 sps:$4 sm:$0xff]   ;;  %s3019_s1 = sld [smem:[#allocation3]] }
  0x7b   :  { %856 = vmatprep.mubr.bf16.mxu0 %v2870_v0  ;;  %897 = vmatprep.mubr.bf16.mxu1 %v2870_v0  ;;  %v2471_v2 = vld [vmem:[#allocation7] ss:$48 sps:$4 sm:$0xff]   ;;  %s3021_s25 = sld [smem:[#allocation3 + $0x1]]  ;;  %v2472_v3 = vld [vmem:[#allocation7 + $0x64] ss:$48 sps:$4 sm:$0xff]   ;;  %s3023_s7 = sld [smem:[#allocation3 + $0x2]] }
  0x7c   :  { %824 = vmatprep.subr.bf16.mxu0 %v2469_v1  ;;  %v2474_v4 = vld [vmem:[#allocation7 + $0x60] ss:$48 sps:$4 sm:$0xff]   ;;  %s3025_s2 = sld [smem:[#allocation3 + $0x3]]  ;;  %v2475_v5 = vld [vmem:[#allocation7 + $0xc4] ss:$48 sps:$4 sm:$0xff]   ;;  %s3027_s20 = sld [smem:[#allocation3 + $0x4]] }
  0x7d   :  { %825 = vmatpush1.bf16.msra.mxu0 %v2471_v2  ;;  %s3029_s27 = sld [smem:[#allocation3 + $0x5]]  ;;  %s3031_s28 = sld [smem:[#allocation3 + $0x6]]  ;;  %v2481_v6 = vld [vmem:[#allocation7 + $0xc] ss:$48 sps:$4 sm:$0xff]   ;;  %v2483_v7 = vld [vmem:[#allocation7 + $0x8] ss:$48 sps:$4 sm:$0xff]  }
  0x7e   :  { %826 = vmatprep.subr.bf16.mxu0 %v2472_v3  ;;  %v2477_v8 = vld [vmem:[#allocation7 + $0xc0] ss:$48 sps:$4 sm:$0xff]   ;;  %v2478_v9 = vld [vmem:[#allocation7 + $0x124] ss:$48 sps:$4 sm:$0xff]   ;;  %865 = vmatprep.subr.bf16.mxu1 %v2481_v6  ;;  %v2487_v10 = vld [vmem:[#allocation7 + $0x6c] ss:$48 sps:$4 sm:$0xff]  }
  0x7f   :  { %s3033_s29 = sld [smem:[#allocation3 + $0x7]]  ;;  %866 = vmatpush1.bf16.msra.mxu1 %v2483_v7  ;;  %v2489_v11 = vld [vmem:[#allocation7 + $0x68] ss:$48 sps:$4 sm:$0xff]   ;;  %v2480_v12 = vld [vmem:[#allocation7 + $0x120] ss:$48 sps:$4 sm:$0xff]   ;;  %vm169_vm0 = vcmask 1040384  }
  0x80   :  { %867 = vmatprep.subr.bf16.mxu1 %v2487_v10  ;;  %v2493_v13 = vld [vmem:[#allocation7 + $0xcc] ss:$48 sps:$4 sm:$0xff]   ;;  %v2484_v14 = vld [vmem:[#allocation7 + $0x184] ss:$48 sps:$4 sm:$0xff]   ;;  %v2495_v15 = vld [vmem:[#allocation7 + $0xc8] ss:$48 sps:$4 sm:$0xff]  }
  0x81   :  { %827 = vmatpush1.bf16.msra.mxu0 %v2474_v4  ;;  %v2499_v16 = vld [vmem:[#allocation7 + $0x12c] ss:$48 sps:$4 sm:$0xff]   ;;  %v2486_v17 = vld [vmem:[#allocation7 + $0x180] ss:$48 sps:$4 sm:$0xff]   ;;  %vm171_vm1 = vcmask 1041408   ;;  %s122_s30 = scalar_lea.vmem [#allocation4], %s3021_s25 }
  0x82   :  { %828 = vmatprep.subr.bf16.mxu0 %v2475_v5  ;;  %v2490_v18 = vld [vmem:[#allocation7 + $0x1e4] ss:$48 sps:$4 sm:$0xff]   ;;  %v2492_v19 = vld [vmem:[#allocation7 + $0x1e0] ss:$48 sps:$4 sm:$0xff]   ;;  %v2501_v20 = vld [vmem:[#allocation7 + $0x128] ss:$48 sps:$4 sm:$0xff]  }
  0x83   :  { %868 = vmatpush1.bf16.msra.mxu1 %v2489_v11  ;;  %v2505_v21 = vld [vmem:[#allocation7 + $0x18c] ss:$48 sps:$4 sm:$0xff]   ;;  %v123_v22 = vld [vmem:[%s122_s30] sm:$0x1]  ;;  %v2496_v23 = vld [vmem:[#allocation7 + $0x244] ss:$48 sps:$4 sm:$0xff]  }
  0x84   :  { %869 = vmatprep.subr.bf16.mxu1 %v2493_v13  ;;  %s126_s10 = scalar_lea.vmem [#allocation4], %s3023_s7  ;;  %s130_s11 = scalar_lea.vmem [#allocation4], %s3025_s2  ;;  %v149_v30 = vrot.slane %v123_v22, 7  ;;  %vm173_vm2 = vcmask 1042432   ;;  %v2507_v33 = vld [vmem:[#allocation7 + $0x188] ss:$48 sps:$4 sm:$0xff]  }
  0x85   :  { %829 = vmatpush1.bf16.msra.mxu0 %v2477_v8  ;;  %v127_v24 = vld [vmem:[%s126_s10] sm:$0x1]  ;;  %s134_s4 = scalar_lea.vmem [#allocation4], %s3027_s20  ;;  %s118_s12 = scalar_lea.vmem [#allocation4], %s3019_s1  ;;  %vm175_vm3 = vcmask 1043456   ;;  %vm177_vm4 = vcmask 1044480  }
  0x86   :  { %830 = vmatprep.subr.bf16.mxu0 %v2478_v9  ;;  %v131_v25 = vld [vmem:[%s130_s11] sm:$0x1]  ;;  %s138_s13 = scalar_lea.vmem [#allocation4], %s3029_s27  ;;  %s142_s3 = scalar_lea.vmem [#allocation4], %s3031_s28  ;;  %v152_v31 = vrot.slane %v127_v24, 6  ;;  %vm179_vm5 = vcmask 1045504  }
  0x87   :  { %870 = vmatpush1.bf16.msra.mxu1 %v2495_v15  ;;  %v135_v26 = vld [vmem:[%s134_s4] sm:$0x1]  ;;  %v155_v32 = vrot.slane %v131_v25, 5  ;;  %s146_s14 = scalar_lea.vmem [#allocation4], %s3033_s29  ;;  %v2511_v38 = vld [vmem:[#allocation7 + $0x1ec] ss:$48 sps:$4 sm:$0xff]  }
  0x88   :  { %871 = vmatprep.subr.bf16.mxu1 %v2499_v16  ;;  %v119_v27 = vld [vmem:[%s118_s12] sm:$0x1]  ;;  %v158_v35 = vrot.slane %v135_v26, 4  ;;  %v2502_v42 = vld [vmem:[#allocation7 + $0x2a4] ss:$48 sps:$4 sm:$0xff]   ;;  %vm181_vm6 = vcmask 1046528  }
  0x89   :  { %831 = vmatpush1.bf16.msra.mxu0 %v2480_v12  ;;  %v139_v28 = vld [vmem:[%s138_s13] sm:$0x1]  ;;  %v170_v37 = vsel %vm169_vm0, %v119_v27, %v149_v30  ;;  %v2513_v46 = vld [vmem:[#allocation7 + $0x1e8] ss:$48 sps:$4 sm:$0xff]   ;;  %v2517_v48 = vld [vmem:[#allocation7 + $0x24c] ss:$48 sps:$4 sm:$0xff]  }
  0x8a   :  { %832 = vmatprep.subr.bf16.mxu0 %v2484_v14  ;;  %v143_v29 = vld [vmem:[%s142_s3] sm:$0x1]  ;;  %v161_v36 = vrot.slane %v139_v28, 3  ;;  %v172_v41 = vsel %vm171_vm1, %v170_v37, %v152_v31  ;;  %v2510_v52 = vld [vmem:[#allocation7 + $0x14] ss:$48 sps:$4 sm:$0xff]   ;;  %vm2872_vm7 = vmmov 0  }
  0x8b   :  { %872 = vmatpush1.bf16.msra.mxu1 %v2501_v20  ;;  %v147_v34 = vld [vmem:[%s146_s14] sm:$0x1]  ;;  %v164_v40 = vrot.slane %v143_v29, 2  ;;  %v174_v44 = vsel %vm173_vm2, %v172_v41, %v155_v32  ;;  %v2519_v53 = vld [vmem:[#allocation7 + $0x248] ss:$48 sps:$4 sm:$0xff]   ;;  %vm1112_vm8 = vcmask 64512  }
  0x8c   :  { %873 = vmatprep.subr.bf16.mxu1 %v2505_v21  ;;  %v2498_v39 = vld [vmem:[#allocation7 + $0x240] ss:$48 sps:$4 sm:$0xff]   ;;  %v167_v43 = vrot.slane %v147_v34, 1  ;;  %v176_v45 = vsel %vm175_vm3, %v174_v44, %v158_v35  ;;  %v2523_v55 = vld [vmem:[#allocation7 + $0x2ac] ss:$48 sps:$4 sm:$0xff]   ;;  %s2873_s25 = smov [#allocation15]  }
  0x8d   :  { %833 = vmatpush1.bf16.msra.mxu0 %v2486_v17  ;;  %v178_v47 = vsel %vm177_vm4, %v176_v45, %v161_v36  ;;  %v2504_v49 = vld [vmem:[#allocation7 + $0x2a0] ss:$48 sps:$4 sm:$0xff]   ;;  %v2516_v57 = vld [vmem:[#allocation7 + $0x74] ss:$48 sps:$4 sm:$0xff]   ;;  %v2525_v58 = vld [vmem:[#allocation7 + $0x2a8] ss:$48 sps:$4 sm:$0xff]  }
  0x8e   :  { %834 = vmatprep.subr.bf16.mxu0 %v2490_v18  ;;  %v180_v50 = vsel %vm179_vm5, %v178_v47, %v164_v40  ;;  %v2508_v56 = vld [vmem:[#allocation7 + $0x10] ss:$48 sps:$4 sm:$0xff]   ;;  %v2531_v59 = vld [vmem:[#allocation7 + $0x1c] ss:$48 sps:$4 sm:$0xff]   ;;  %v2522_v61 = vld [vmem:[#allocation7 + $0xd4] ss:$48 sps:$4 sm:$0xff]  }
  0x8f   :  { %874 = vmatpush1.bf16.msra.mxu1 %v2507_v33  ;;  %v3047_v51 = vsel %vm181_vm6, %v180_v50, %v167_v43  ;;  %v2514_v60 = vld [vmem:[#allocation7 + $0x70] ss:$48 sps:$4 sm:$0xff]   ;;  %v2529_v62 = vld [vmem:[#allocation7 + $0x18] ss:$48 sps:$4 sm:$0xff]   ;;  %v2537_v63 = vld [vmem:[#allocation7 + $0x7c] ss:$48 sps:$4 sm:$0xff]  }
  0x90   :  { %875 = vmatprep.subr.bf16.mxu1 %v2511_v38  ;;  %v3051_v54 = vpack.c.bf16 %v3047_v51, %v3047_v51  ;;  %v2520_v1 = vld [vmem:[#allocation7 + $0xd0] ss:$48 sps:$4 sm:$0xff]   ;;  %v2528_v2 = vld [vmem:[#allocation7 + $0x134] ss:$48 sps:$4 sm:$0xff]   ;;  %v2535_v3 = vld [vmem:[#allocation7 + $0x78] ss:$48 sps:$4 sm:$0xff]  }
  0x91   :  { %835 = vmatpush1.bf16.msra.mxu0 %v2492_v19  ;;  %v2543_v4 = vld [vmem:[#allocation7 + $0xdc] ss:$48 sps:$4 sm:$0xff]   ;;  %v2526_v5 = vld [vmem:[#allocation7 + $0x130] ss:$48 sps:$4 sm:$0xff]   ;;  %v2534_v6 = vld [vmem:[#allocation7 + $0x194] ss:$48 sps:$4 sm:$0xff]  }
  0x92   :  { %836 = vmatprep.subr.bf16.mxu0 %v2496_v23  ;;  %v2532_v7 = vld [vmem:[#allocation7 + $0x190] ss:$48 sps:$4 sm:$0xff]   ;;  %v2541_v8 = vld [vmem:[#allocation7 + $0xd8] ss:$48 sps:$4 sm:$0xff]   ;;  %v2549_v9 = vld [vmem:[#allocation7 + $0x13c] ss:$48 sps:$4 sm:$0xff]  }
  0x93   :  { %876 = vmatpush1.bf16.msra.mxu1 %v2513_v46  ;;  %v2540_v10 = vld [vmem:[#allocation7 + $0x1f4] ss:$48 sps:$4 sm:$0xff]   ;;  %v2547_v11 = vld [vmem:[#allocation7 + $0x138] ss:$48 sps:$4 sm:$0xff]   ;;  %v2555_v12 = vld [vmem:[#allocation7 + $0x19c] ss:$48 sps:$4 sm:$0xff]  }
  0x94   :  { %877 = vmatprep.subr.bf16.mxu1 %v2517_v48  ;;  %v2538_v13 = vld [vmem:[#allocation7 + $0x1f0] ss:$48 sps:$4 sm:$0xff]   ;;  %v2546_v14 = vld [vmem:[#allocation7 + $0x254] ss:$48 sps:$4 sm:$0xff]   ;;  %v2553_v15 = vld [vmem:[#allocation7 + $0x198] ss:$48 sps:$4 sm:$0xff]  }
  0x95   :  { %837 = vmatpush1.bf16.msra.mxu0 %v2498_v39  ;;  %v2558_v16 = vld [vmem:[#allocation7 + $0x1fc] ss:$48 sps:$4 sm:$0xff]   ;;  %v2544_v17 = vld [vmem:[#allocation7 + $0x250] ss:$48 sps:$4 sm:$0xff]   ;;  %v2552_v18 = vld [vmem:[#allocation7 + $0x2b4] ss:$48 sps:$4 sm:$0xff]  }
  0x96   :  { %838 = vmatprep.subr.bf16.mxu0 %v2502_v42  ;;  %v2556_v19 = vld [vmem:[#allocation7 + $0x1f8] ss:$48 sps:$4 sm:$0xff]   ;;  %v2561_v20 = vld [vmem:[#allocation7 + $0x25c] ss:$48 sps:$4 sm:$0xff]   ;;  %v2550_v21 = vld [vmem:[#allocation7 + $0x2b0] ss:$48 sps:$4 sm:$0xff]  }
  0x97   :  { %878 = vmatpush1.bf16.msra.mxu1 %v2519_v53  ;;  %v2567_v22 = vld [vmem:[#allocation7 + $0x24] ss:$48 sps:$4 sm:$0xff]   ;;  %v2559_v23 = vld [vmem:[#allocation7 + $0x258] ss:$48 sps:$4 sm:$0xff]   ;;  %v2564_v24 = vld [vmem:[#allocation7 + $0x2bc] ss:$48 sps:$4 sm:$0xff]  }
  0x98   :  { %879 = vmatprep.subr.bf16.mxu1 %v2523_v55  ;;  %v2565_v25 = vld [vmem:[#allocation7 + $0x20] ss:$48 sps:$4 sm:$0xff]   ;;  %v2562_v26 = vld [vmem:[#allocation7 + $0x2b8] ss:$48 sps:$4 sm:$0xff]   ;;  %v2570_v27 = vld [vmem:[#allocation7 + $0x84] ss:$48 sps:$4 sm:$0xff]  }
  0x99   :  { %839 = vmatpush1.bf16.msra.mxu0 %v2504_v49  ;;  %v2568_v28 = vld [vmem:[#allocation7 + $0x80] ss:$48 sps:$4 sm:$0xff]   ;;  %v2573_v30 = vld [vmem:[#allocation7 + $0xe4] ss:$48 sps:$4 sm:$0xff]   ;;  %v2871_v40 = vmov 0.0   ;;  %s2104_s7 = sshll.u32 %s2873_s25, 4  ;;  %s2105_s7 = int_to_ptr.vmem [resolvable:$true] %s2104_s7 }
  0x9a   :  { %906 = vmatprep.subr.bf16.mxu0 %v2510_v52  ;;  %v2571_v29 = vld [vmem:[#allocation7 + $0xe0] ss:$48 sps:$4 sm:$0xff]   ;;  %v2576_v31 = vld [vmem:[#allocation7 + $0x144] ss:$48 sps:$4 sm:$0xff]   ;;  %v2589_v41 = vld [vmem:[#allocation7 + $0x28] ss:$48 sps:$4 sm:$0xff]   ;;  %p2828_p10 = scmp.lt.s32.totalorder %s2105_s7, %s2105_s7 }
  0x9b   :  { %880 = vmatpush1.bf16.msra.mxu1 %v2525_v58  ;;  %v2574_v32 = vld [vmem:[#allocation7 + $0x140] ss:$48 sps:$4 sm:$0xff]   ;;  %v2579_v33 = vld [vmem:[#allocation7 + $0x1a4] ss:$48 sps:$4 sm:$0xff]   ;;  %v2591_v42 = vld [vmem:[#allocation7 + $0x2c] ss:$48 sps:$4 sm:$0xff]  }
  0x9c   :  { %857 = vmatmul.mubr.bf16.vlgmr.msra.gmra.mrb[0].mxu0 %v3051_v54  ;;  %947 = vmatprep.subr.bf16.mxu1 %v2531_v59  ;;  %v2577_v34 = vld [vmem:[#allocation7 + $0x1a0] ss:$48 sps:$4 sm:$0xff]   ;;  %v2582_v35 = vld [vmem:[#allocation7 + $0x204] ss:$48 sps:$4 sm:$0xff]   ;;  %v2594_v43 = vld [vmem:[#allocation7 + $0x8c] ss:$48 sps:$4 sm:$0xff]  }
  0x9d   :  { %907 = vmatpush1.bf16.msra.mxu0 %v2508_v56  ;;  %938 = vmatprep.mubr.bf16.mxu0 %v2870_v0  ;;  %v2580_v36 = vld [vmem:[#allocation7 + $0x200] ss:$48 sps:$4 sm:$0xff]   ;;  %v2588_v38 = vld [vmem:[#allocation7 + $0x2c4] ss:$48 sps:$4 sm:$0xff]   ;;  %v2592_v44 = vld [vmem:[#allocation7 + $0x88] ss:$48 sps:$4 sm:$0xff]  }
  0x9e   :  { %908 = vmatprep.subr.bf16.mxu0 %v2516_v57  ;;  %898 = vmatmul.mubr.bf16.vlgmr.msra.gmra.mrb[0].mxu1 %v3051_v54  ;;  %v2583_v37 = vld [vmem:[#allocation7 + $0x260] ss:$48 sps:$4 sm:$0xff]   ;;  %v2597_v45 = vld [vmem:[#allocation7 + $0xec] ss:$48 sps:$4 sm:$0xff]   ;;  %v2595_v46 = vld [vmem:[#allocation7 + $0xe8] ss:$48 sps:$4 sm:$0xff]  }
  0x9f   :  { %948 = vmatpush1.bf16.msra.mxu1 %v2529_v62  ;;  %979 = vmatprep.mubr.bf16.mxu1 %v2870_v0  ;;  %v2586_v39 = vld [vmem:[#allocation7 + $0x2c0] ss:$48 sps:$4 sm:$0xff]   ;;  %v2600_v47 = vld [vmem:[#allocation7 + $0x14c] ss:$48 sps:$4 sm:$0xff]   ;;  %v2598_v48 = vld [vmem:[#allocation7 + $0x148] ss:$48 sps:$4 sm:$0xff]  }
  0xa0   :  { %949 = vmatprep.subr.bf16.mxu1 %v2537_v63  ;;  %v2603_v49 = vld [vmem:[#allocation7 + $0x1ac] ss:$48 sps:$4 sm:$0xff]   ;;  %v2601_v50 = vld [vmem:[#allocation7 + $0x1a8] ss:$48 sps:$4 sm:$0xff]   ;;  %s2823_s2 = scalar_lea.vmem %s2105_s7, 128 }
  0xa1   :  { %909 = vmatpush1.bf16.msra.mxu0 %v2514_v60  ;;  %v2606_v52 = vld [vmem:[#allocation7 + $0x20c] ss:$48 sps:$4 sm:$0xff]   ;;  %v2604_v53 = vld [vmem:[#allocation7 + $0x208] ss:$48 sps:$4 sm:$0xff]   ;;  %p2824_p9 = scmp.ne.s32.totalorder %s2105_s7, %s2823_s2  ;;  %p2829_p11 = scmp.lt.s32.totalorder %s2823_s2, %s2823_s2 }
  0xa2   :  { %910 = vmatprep.subr.bf16.mxu0 %v2522_v61  ;;  %v2607_v55 = vld [vmem:[#allocation7 + $0x268] ss:$48 sps:$4 sm:$0xff]   ;;  %v2609_v56 = vld [vmem:[#allocation7 + $0x26c] ss:$48 sps:$4 sm:$0xff]  }
  0xa3   :  { %950 = vmatpush1.bf16.msra.mxu1 %v2535_v3  ;;  %v2612_v57 = vld [vmem:[#allocation7 + $0x2cc] ss:$48 sps:$4 sm:$0xff]   ;;  %v2610_v58 = vld [vmem:[#allocation7 + $0x2c8] ss:$48 sps:$4 sm:$0xff]   ;;  %p2830_p12 = por %p2829_p11, %p2828_p10 }
  0xa4   :  { %951 = vmatprep.subr.bf16.mxu1 %v2543_v4  ;;  %v284_v4 = vlaneseq }
  0xa5   :  { %911 = vmatpush1.bf16.msra.mxu0 %v2520_v1  ;;  %p2831_p13 = pnand %p2830_p12, %p2824_p9 }
  0xa6   :  { %912 = vmatprep.subr.bf16.mxu0 %v2528_v2 }
  0xa7   :  { %952 = vmatpush1.bf16.msra.mxu1 %v2541_v8 }
  0xa8   :  { %953 = vmatprep.subr.bf16.mxu1 %v2549_v9 }
  0xa9   :  { %913 = vmatpush1.bf16.msra.mxu0 %v2526_v5  ;;  %v3069_v5 = vshrl.u32 %v284_v4, 7 }
  0xaa   :  { %914 = vmatprep.subr.bf16.mxu0 %v2534_v6 }
  0xab   :  { %954 = vmatpush1.bf16.msra.mxu1 %v2547_v11  ;;  %v302_v6 = vsub.s32 4, %v3069_v5  ;;  %v286_v9 = vsub.s32 0, %v3069_v5 }
  0xac   :  { %955 = vmatprep.subr.bf16.mxu1 %v2555_v12 }
  0xad   :  { %915 = vmatpush1.bf16.msra.mxu0 %v2532_v7  ;;  %v280_v7 = vld [vmem:[#allocation9] sm:$0xff] }
  0xae   :  { %916 = vmatprep.subr.bf16.mxu0 %v2540_v10  ;;  %v303_v8 = vrot.slane %v280_v7, %v302_v6 }
  0xaf   :  { %956 = vmatpush1.bf16.msra.mxu1 %v2553_v15 }
  0xb0   :  { %957 = vmatprep.subr.bf16.mxu1 %v2558_v16 }
  0xb1   :  { %917 = vmatpush1.bf16.msra.mxu0 %v2538_v13  ;;  %v287_v13 = vrot.slane %v280_v7, %v286_v9 }
  0xb2   :  { %918 = vmatprep.subr.bf16.mxu0 %v2546_v14 }
  0xb3   :  { %958 = vmatpush1.bf16.msra.mxu1 %v2556_v19 }
  0xb4   :  { %959 = vmatprep.subr.bf16.mxu1 %v2561_v20  ;;  %v290_v20 = vsub.s32 1, %v3069_v5 }
  0xb5   :  { %919 = vmatpush1.bf16.msra.mxu0 %v2544_v17 }
  0xb6   :  { %920 = vmatprep.subr.bf16.mxu0 %v2552_v18  ;;  %v310_v18 = vsub.s32 6, %v3069_v5 }
  0xb7   :  { %960 = vmatpush1.bf16.msra.mxu1 %v2559_v23 }
  0xb8   :  { %961 = vmatprep.subr.bf16.mxu1 %v2564_v24 }
  0xb9   :  { %921 = vmatpush1.bf16.msra.mxu0 %v2550_v21 }
  0xba   :  { %988 = vmatprep.subr.bf16.mxu0 %v2567_v22 }
  0xbb   :  { %962 = vmatpush1.bf16.msra.mxu1 %v2562_v26 }
  0xbc   :  { %939 = vmatmul.mubr.bf16.vlgmr.msra.gmra.mrb[4].mxu0 %v3051_v54  ;;  %1029 = vmatprep.subr.bf16.mxu1 %v2591_v42 }
  0xbd   :  { %989 = vmatpush1.bf16.msra.mxu0 %v2565_v25  ;;  %1020 = vmatprep.mubr.bf16.mxu0 %v2870_v0  ;;  %v311_v25 = vrot.slane %v280_v7, %v310_v18 }
  0xbe   :  { %980 = vmatmul.mubr.bf16.vlgmr.msra.gmra.mrb[4].mxu1 %v3051_v54  ;;  %990 = vmatprep.subr.bf16.mxu0 %v2570_v27 }
  0xbf   :  { %1061 = vmatprep.mubr.bf16.mxu1 %v2870_v0  ;;  %v2585_v0 = vld [vmem:[#allocation7 + $0x264] ss:$48 sps:$4 sm:$0xff]   ;;  %1030 = vmatpush1.bf16.msra.mxu1 %v2589_v41 }
  0xc0   :  { %1031 = vmatprep.subr.bf16.mxu1 %v2594_v43 }
  0xc1   :  { %991 = vmatpush1.bf16.msra.mxu0 %v2568_v28  ;;  %v291_v28 = vrot.slane %v280_v7, %v290_v20 }
  0xc2   :  { %992 = vmatprep.subr.bf16.mxu0 %v2573_v30 }
  0xc3   :  { %1032 = vmatpush1.bf16.msra.mxu1 %v2592_v44 }
  0xc4   :  { %1033 = vmatprep.subr.bf16.mxu1 %v2597_v45 }
  0xc5   :  { %993 = vmatpush1.bf16.msra.mxu0 %v2571_v29 }
  0xc6   :  { %994 = vmatprep.subr.bf16.mxu0 %v2576_v31 }
  0xc7   :  { %1034 = vmatpush1.bf16.msra.mxu1 %v2595_v46  ;;  %v3094_v46 = vld [vmem:[#allocation9 + $0x8] sm:$0xf] }
  0xc8   :  { %1035 = vmatprep.subr.bf16.mxu1 %v2600_v47  ;;  %v319_v47 = vrot.slane %v3094_v46, %v286_v9 }
  0xc9   :  { %995 = vmatpush1.bf16.msra.mxu0 %v2574_v32  ;;  %v294_v32 = vsub.s32 2, %v3069_v5 }
  0xca   :  { %996 = vmatprep.subr.bf16.mxu0 %v2579_v33  ;;  %v314_v33 = vsub.s32 7, %v3069_v5 }
  0xcb   :  { %1036 = vmatpush1.bf16.msra.mxu1 %v2598_v48 }
  0xcc   :  { %1037 = vmatprep.subr.bf16.mxu1 %v2603_v49 }
  0xcd   :  { %997 = vmatpush1.bf16.msra.mxu0 %v2577_v34 }
  0xce   :  { %998 = vmatprep.subr.bf16.mxu0 %v2582_v35 }
  0xcf   :  { %1038 = vmatpush1.bf16.msra.mxu1 %v2601_v50 }
  0xd0   :  { %1039 = vmatprep.subr.bf16.mxu1 %v2606_v52 }
  0xd1   :  { %999 = vmatpush1.bf16.msra.mxu0 %v2580_v36  ;;  %v295_v36 = vrot.slane %v280_v7, %v294_v32 }
  0xd2   :  { %1000 = vmatprep.subr.bf16.mxu0 %v2585_v0  ;;  %v315_v0 = vrot.slane %v280_v7, %v314_v33 }
  0xd3   :  { %1040 = vmatpush1.bf16.msra.mxu1 %v2604_v53 }
  0xd4   :  { %1041 = vmatprep.subr.bf16.mxu1 %v2609_v56 }
  0xd5   :  { %1001 = vmatpush1.bf16.msra.mxu0 %v2583_v37 }
  0xd6   :  { %1002 = vmatprep.subr.bf16.mxu0 %v2588_v38  ;;  %v298_v38 = vsub.s32 3, %v3069_v5 }
  0xd7   :  { %1042 = vmatpush1.bf16.msra.mxu1 %v2607_v55 }
  0xd8   :  { %1043 = vmatprep.subr.bf16.mxu1 %v2612_v57  ;;  %v299_v42 = vrot.slane %v280_v7, %v298_v38 }
  0xd9   :  { %1003 = vmatpush1.bf16.msra.mxu0 %v2586_v39 }
  0xda   :  { %2364 = vmatprep.subr.bf16.mxu0 %v2871_v40 }
  0xdb   :  { %1044 = vmatpush1.bf16.msra.mxu1 %v2610_v58 }
  0xdc   :  { %1021 = vmatmul.mubr.bf16.vlgmr.msra.gmra.mrb[8].mxu0 %v3051_v54  ;;  %2370 = vmatprep.subr.bf16.mxu1 %v2871_v40 }
  0xdd   :  { %2366 = vmatprep.mubr.msk.bf16.mxu0 %vm2872_vm7, %v2871_v40 }
  0xde   :  { %1062 = vmatmul.mubr.bf16.vlgmr.msra.gmra.mrb[8].mxu1 %v3051_v54  ;;  %v306_v54 = vsub.s32 5, %v3069_v5 }
  0xdf   :  { %2372 = vmatprep.mubr.msk.bf16.mxu1 %vm2872_vm7, %v2871_v40 }
  0xe0   :  { %v307_v16 = vrot.slane %v280_v7, %v306_v54 }
 0x16f   :  { %v858_v59 = vpop.f32.mrb[0].mxu0 }
 0x170   :  { %v860_v60 = vpop.f32.mrb[1].mxu0  ;;  %v859_v19 = vadd.f32 %v858_v59, %v287_v13 }
 0x171   :  { %v862_v61 = vpop.f32.mrb[2].mxu0  ;;  %v899_v63 = vpop.f32.mrb[0].mxu1  ;;  %v861_v31 = vadd.f32 %v860_v60, %v291_v28 }
 0x172   :  { %v863_v62 = vpop.f32.mrb[3].mxu0  ;;  %v901_v1 = vpop.f32.mrb[1].mxu1  ;;  %v1070_v27 = vpack.c.bf16 %v859_v19, %v859_v19  ;;  %v900_v37 = vadd.f32 %v899_v63, %v295_v36 }
 0x173   :  { %v903_v2 = vpop.f32.mrb[2].mxu1  ;;  %v1172_v35 = vpack.c.bf16 %v861_v31, %v861_v31  ;;  %v902_v44 = vadd.f32 %v901_v1, %v299_v42  ;;  %v2614_v42 = vld [vmem:[#allocation10] sm:$0xff]  }
 0x174   :  { %v904_v3 = vpop.f32.mrb[3].mxu1  ;;  %v1273_v41 = vpack.c.bf16 %v900_v37, %v900_v37 }
 0x175   :  { %v1374_v45 = vpack.c.bf16 %v902_v44, %v902_v44  ;;  %v2616_v44 = vld [vmem:[#allocation10 + $0x8] sm:$0xff]  }
 0x18f   :  { %v940_v10 = vpop.f32.mrb[4].mxu0 }
 0x190   :  { %v941_v11 = vadd.f32 %v940_v10, %v303_v8  ;;  %v942_v12 = vpop.f32.mrb[5].mxu0 }
 0x191   :  { %v944_v14 = vpop.f32.mrb[6].mxu0  ;;  %v981_v21 = vpop.f32.mrb[4].mxu1  ;;  %v943_v22 = vadd.f32 %v942_v12, %v307_v16 }
 0x192   :  { %v1071_v15 = vpack.c.bf16 %v941_v11, %v941_v11  ;;  %v945_v17 = vpop.f32.mrb[7].mxu0  ;;  %v983_v23 = vpop.f32.mrb[5].mxu1  ;;  %v982_v30 = vadd.f32 %v981_v21, %v311_v25 }
 0x193   :  { %v985_v24 = vpop.f32.mrb[6].mxu1  ;;  %v1173_v29 = vpack.c.bf16 %v943_v22, %v943_v22  ;;  %v984_v39 = vadd.f32 %v983_v23, %v315_v0 }
 0x194   :  { %2365 = vmatpush3.bf16.xpose.msra.mxu0 %v1071_v15  ;;  %v986_v26 = vpop.f32.mrb[7].mxu1  ;;  %v1274_v34 = vpack.c.bf16 %v982_v30, %v982_v30 }
 0x195   :  { %2376 = vmatprep.subr.bf16.mxu0 %v2871_v40  ;;  %v1375_v43 = vpack.c.bf16 %v984_v39, %v984_v39 }
 0x19b   :  { %2367 = vmatmul.mubr.bf16.vlgmr.msra.gmra.mrb[12].mxu0 %v1070_v27 }
 0x19c   :  { %2377 = vmatpush3.bf16.xpose.msra.mxu0 %v1173_v29  ;;  %2378 = vmatprep.mubr.msk.bf16.mxu0 %vm2872_vm7, %v2871_v40 }
 0x19d   :  { %2388 = vmatprep.subr.bf16.mxu0 %v2871_v40 }
 0x1a3   :  { %2379 = vmatmul.mubr.bf16.vlgmr.msra.gmra.mrb[16].mxu0 %v1172_v35 }
 0x1a4   :  { %2389 = vmatpush3.bf16.xpose.msra.mxu0 %v1274_v34  ;;  %2390 = vmatprep.mubr.msk.bf16.mxu0 %vm2872_vm7, %v2871_v40 }
 0x1a5   :  { %2400 = vmatprep.subr.bf16.mxu0 %v2871_v40 }
 0x1ab   :  { %2391 = vmatmul.mubr.bf16.vlgmr.msra.gmra.mrb[20].mxu0 %v1273_v41  ;;  %v2613_v41 = vld [vmem:[#allocation10 + $0x40] sm:$0xff]  }
 0x1ac   :  { %2401 = vmatpush3.bf16.xpose.msra.mxu0 %v1375_v43  ;;  %2402 = vmatprep.mubr.msk.bf16.mxu0 %vm2872_vm7, %v2871_v40  ;;  %v2615_v43 = vld [vmem:[#allocation10 + $0x48] sm:$0xff]  }
 0x1ad   :  { %2302 = vmatprep.subr.bf16.mxu0 %v2613_v41 }
 0x1af   :  { %v1022_v48 = vpop.f32.mrb[8].mxu0 }
 0x1b0   :  { %v1023_v49 = vadd.f32 %v1022_v48, %v319_v47  ;;  %v3097_v50 = vpop.f32.mrb[9].mxu0  ;;  %v2618_v47 = vld [vmem:[#allocation10 + $0x10] sm:$0xff]   ;;  %v2619_v48 = vld [vmem:[#allocation10 + $0x58] sm:$0xff]  }
 0x1b1   :  { %v1026_v52 = vpop.f32.mrb[10].mxu0  ;;  %v1063_v36 = vpop.f32.mrb[8].mxu1 }
 0x1b2   :  { %v1125_v53 = vpack.c.bf16 %v1023_v49, %v1023_v49  ;;  %v1027_v55 = vpop.f32.mrb[11].mxu0  ;;  %v1065_v0 = vpop.f32.mrb[9].mxu1  ;;  %v2620_v49 = vld [vmem:[#allocation10 + $0x18] sm:$0xff]   ;;  %v2621_v52 = vld [vmem:[#allocation10 + $0x60] sm:$0xff]  }
 0x1b3   :  { %2403 = vmatmul.mubr.bf16.vlgmr.msra.gmra.mrb[24].mxu0 %v1374_v45  ;;  %v1067_v37 = vpop.f32.mrb[10].mxu1  ;;  %v2617_v45 = vld [vmem:[#allocation10 + $0x50] sm:$0xff]  }
 0x1b4   :  { %v1130_v56 = vsel %vm175_vm3, %v1125_v53, 0  ;;  %v1068_v39 = vpop.f32.mrb[11].mxu1  ;;  %2303 = vmatpush3.bf16.msra.mxu0 %v2614_v42  ;;  %v2623_v53 = vld [vmem:[#allocation10 + $0x20] sm:$0xff]  }
 0x1b5   :  { %2371 = vmatpush3.bf16.msra.mxu1 %v1130_v56  ;;  %2304 = vmatprep.subr.bf16.mxu0 %v2615_v43  ;;  %v323_v56 = vrot.slane %v3094_v46, %v290_v20 }
 0x1b6   :  { %2382 = vmatprep.subr.bf16.mxu1 %v2871_v40 }
 0x1b8   :  { %2305 = vmatpush3.bf16.msra.mxu0 %v2616_v44 }
 0x1b9   :  { %2306 = vmatprep.subr.bf16.mxu0 %v2617_v45 }
 0x1bc   :  { %2307 = vmatpush3.bf16.msra.mxu0 %v2618_v47 }
 0x1bd   :  { %2308 = vmatprep.subr.bf16.mxu0 %v2619_v48 }
 0x1c0   :  { %2309 = vmatpush3.bf16.msra.mxu0 %v2620_v49 }
 0x1c1   :  { %2310 = vmatprep.subr.bf16.mxu0 %v2621_v52 }
 0x1c4   :  { %2311 = vmatpush3.bf16.msra.mxu0 %v2623_v53 }
 0x26e   :  { %v1106_v57 = vpop.f32.mrb[12].mxu0 }
 0x26f   :  { %v2368_v58 = vpop.f32.mrb[13].mxu0  ;;  %v1113_v59 = vsel %vm1112_vm8, %v1106_v57, -inf }
 0x270   :  { %1114 = vmax.xlane.f32.xlu0 %v1113_v59  ;;  %v1109_v60 = vpop.f32.mrb[14].mxu0  ;;  %v327_v59 = vrot.slane %v3094_v46, %v294_v32 }
 0x271   :  { %v2369_v61 = vpop.f32.mrb[15].mxu0 }
 0x276   :  { %v1208_v62 = vpop.f32.mrb[16].mxu0 }
 0x277   :  { %v2380_v63 = vpop.f32.mrb[17].mxu0  ;;  %v1214_v1 = vsel %vm1112_vm8, %v1208_v62, -inf }
 0x278   :  { %1215 = vmax.xlane.f32.xlu0 %v1214_v1  ;;  %v1211_v2 = vpop.f32.mrb[18].mxu0  ;;  %v1064_v63 = vadd.f32 %v1063_v36, %v327_v59  ;;  %v2643_v36 = vld [vmem:[#allocation10 + $0xf8] sm:$0xff]  }
 0x279   :  { %v2381_v3 = vpop.f32.mrb[19].mxu0 }
 0x27a   :  { %v1327_v20 = vpack.c.bf16 %v1064_v63, %v1064_v63 }
 0x27e   :  { %v1309_v4 = vpop.f32.mrb[20].mxu0 }
 0x27f   :  { %v2392_v6 = vpop.f32.mrb[21].mxu0  ;;  %v1315_v7 = vsel %vm1112_vm8, %v1309_v4, -inf }
 0x280   :  { %1316 = vmax.xlane.f32.xlu1 %v1315_v7  ;;  %v1312_v8 = vpop.f32.mrb[22].mxu0  ;;  %v1332_v6 = vsel %vm175_vm3, %v1327_v20, 0 }
 0x281   :  { %v2393_v9 = vpop.f32.mrb[23].mxu0 }
 0x286   :  { %v1410_v54 = vpop.f32.mrb[24].mxu0 }
 0x287   :  { %v2404_v10 = vpop.f32.mrb[25].mxu0  ;;  %v1416_v11 = vsel %vm1112_vm8, %v1410_v54, -inf }
 0x288   :  { %1417 = vmax.xlane.f32.xlu1 %v1416_v11  ;;  %v1413_v12 = vpop.f32.mrb[26].mxu0 }
 0x289   :  { %v2405_v13 = vpop.f32.mrb[27].mxu0 }
 0x2fd   :  { %v1115_v14 = vpop.xlane.xlu0 %1114 }
 0x2fe   :  { %v1116_v15 = vsub.f32 %v1106_v57, %v1115_v14  ;;  %v1025_v57 = vadd.f32 %v3097_v50, %v323_v56  ;;  %v2624_v14 = vld [vmem:[#allocation10 + $0x80] sm:$0xff]  }
 0x300   :  { %v1117_v16 = vmul.f32 1.442695, %v1116_v15  ;;  %v1226_v61 = vpack.c.bf16 %v1025_v57, %v1025_v57 }
 0x302   :  { %2661 = vpow2.f32 %v1117_v16  ;;  %v1231_v2 = vsel %vm175_vm3, %v1226_v61, 0  ;;  %v2625_v16 = vld [vmem:[#allocation10 + $0x68] sm:$0xff]  }
 0x303   :  { %2312 = vmatprep.subr.bf16.mxu0 %v2625_v16  ;;  %v2650_v16 = vld [vmem:[#allocation12 + $0x28] sm:$0xff]  }
 0x305   :  { %v1216_v17 = vpop.xlane.xlu0 %1215 }
 0x306   :  { %v1217_v18 = vsub.f32 %v1208_v62, %v1216_v17  ;;  %v2626_v17 = vld [vmem:[#allocation10 + $0xc8] sm:$0xff]  }
 0x308   :  { %v1218_v19 = vmul.f32 1.442695, %v1217_v18  ;;  %v2627_v18 = vld [vmem:[#allocation10 + $0x28] sm:$0xff]  }
 0x309   :  { %2313 = vmatpush3.bf16.msra.mxu0 %v2627_v18  ;;  %v2652_v18 = vld [vmem:[#allocation12 + $0x38] sm:$0xff]  }
 0x30a   :  { %2663 = vpow2.f32 %v1218_v19  ;;  %v2628_v19 = vld [vmem:[#allocation10 + $0x88] sm:$0xff]  }
 0x30c   :  { %v2662_v21 = vpop.eup %2661 }
 0x30d   :  { %v1317_v22 = vpop.xlane.xlu1 %1316  ;;  %v1119_v23 = vsel %vm1112_vm8, %v2662_v21, 0.0 }
 0x30e   :  { %v1318_v24 = vsub.f32 %v1309_v4, %v1317_v22  ;;  %1120 = vadd.xlane.f32.xlu0 %v1119_v23  ;;  %v331_v4 = vrot.slane %v3094_v46, %v298_v38  ;;  %v2622_v38 = vld [vmem:[#allocation10 + $0xc0] sm:$0xff]   ;;  %v2630_v22 = vld [vmem:[#allocation10 + $0xd0] sm:$0xff]  }
 0x30f   :  { %v2631_v23 = vld [vmem:[#allocation10 + $0x30] sm:$0xff]  }
 0x310   :  { %v1319_v25 = vmul.f32 1.442695, %v1318_v24  ;;  %v1066_v8 = vadd.f32 %v1065_v0, %v331_v4  ;;  %v2632_v24 = vld [vmem:[#allocation10 + $0x90] sm:$0xff]   ;;  %v2644_v0 = vld [vmem:[#allocation10 + $0xb8] sm:$0xff]  }
 0x312   :  { %2665 = vpow2.f32 %v1319_v25  ;;  %v1428_v5 = vpack.c.bf16 %v1066_v8, %v1066_v8  ;;  %v2633_v25 = vld [vmem:[#allocation10 + $0x78] sm:$0xff]  }
 0x314   :  { %v2664_v26 = vpop.eup %2663  ;;  %v1433_v46 = vsel %vm175_vm3, %v1428_v5, 0  ;;  %v2645_v5 = vld [vmem:[#allocation12] sm:$0xff]  }
 0x315   :  { %v1418_v27 = vpop.xlane.xlu1 %1417  ;;  %v1220_v28 = vsel %vm1112_vm8, %v2664_v26, 0.0 }
 0x316   :  { %v1419_v29 = vsub.f32 %v1410_v54, %v1418_v27  ;;  %1221 = vadd.xlane.f32.xlu1 %v1220_v28  ;;  %v2635_v27 = vld [vmem:[#allocation10 + $0x38] sm:$0xff]  }
 0x317   :  { %v2636_v28 = vld [vmem:[#allocation10 + $0x98] sm:$0xff]  }
 0x318   :  { %v1420_v30 = vmul.f32 1.442695, %v1419_v29  ;;  %v2637_v29 = vld [vmem:[#allocation10 + $0xe0] sm:$0xff]  }
 0x31a   :  { %2667 = vpow2.f32 %v1420_v30  ;;  %v2638_v30 = vld [vmem:[#allocation10 + $0xa0] sm:$0xff]  }
 0x31c   :  { %v3107_v31 = vpop.eup %2665 }
 0x31d   :  { %v1321_v33 = vsel %vm1112_vm8, %v3107_v31, 0.0 }
 0x31e   :  { %1322 = vadd.xlane.f32.xlu0 %v1321_v33  ;;  %v2640_v33 = vld [vmem:[#allocation10 + $0xa8] sm:$0xff]  }
 0x324   :  { %v3111_v34 = vpop.eup %2667 }
 0x325   :  { %v1422_v35 = vsel %vm1112_vm8, %v3111_v34, 0.0 }
 0x326   :  { %1423 = vadd.xlane.f32.xlu1 %v1422_v35  ;;  %v2642_v35 = vld [vmem:[#allocation10 + $0xb0] sm:$0xff]  }
 0x39b   :  { %v1121_v55 = vpop.xlane.xlu0 %1120 }
 0x39c   :  { %2669 = vrcp.f32 %v1121_v55 }
 0x3a3   :  { %v1222_v58 = vpop.xlane.xlu1 %1221 }
 0x3a4   :  { %2671 = vrcp.f32 %v1222_v58 }
 0x3a6   :  { %v2670_v60 = vpop.eup %2669 }
 0x3a7   :  { %v1123_v62 = vmul.f32 %v2670_v60, %v2662_v21  ;;  %v2629_v21 = vld [vmem:[#allocation10 + $0x70] sm:$0xff]  }
 0x3a8   :  { %2314 = vmatprep.subr.bf16.mxu0 %v2629_v21  ;;  %v2654_v21 = vld [vmem:[#allocation13 + $0x8] sm:$0xff]  }
 0x3a9   :  { %v1124_v1 = vpack.c.bf16 %v1123_v62, %v1123_v62  ;;  %2315 = vmatpush3.bf16.msra.mxu0 %v2631_v23  ;;  %v2656_v23 = vld [vmem:[#allocation13 + $0x18] sm:$0xff]  }
 0x3aa   :  { %2316 = vmatprep.subr.bf16.mxu0 %v2633_v25  ;;  %v2658_v25 = vld [vmem:[#allocation13 + $0x28] sm:$0xff]  }
 0x3ab   :  { %2373 = vmatmul.mubr.msk.bf16.vlgmr.msra.gmra.mrb[12].mxu1 %vm1112_vm8, %v1124_v1  ;;  %v1323_v3 = vpop.xlane.xlu0 %1322 }
 0x3ac   :  { %2383 = vmatpush3.bf16.msra.mxu1 %v1231_v2  ;;  %2673 = vrcp.f32 %v1323_v3  ;;  %2384 = vmatprep.mubr.msk.bf16.mxu1 %vm2872_vm7, %v2871_v40 }
 0x3ad   :  { %2394 = vmatprep.subr.bf16.mxu1 %v2871_v40  ;;  %2317 = vmatpush3.bf16.msra.mxu0 %v2635_v27 }
 0x3ae   :  { %v2672_v50 = vpop.eup %2671  ;;  %2412 = vmatprep.subr.bf16.mxu0 %v2871_v40 }
 0x3af   :  { %v1224_v32 = vmul.f32 %v2672_v50, %v2664_v26  ;;  %v2634_v26 = vld [vmem:[#allocation10 + $0xd8] sm:$0xff]   ;;  %v2231_v50 = vld [vmem:[%s3204_s8] ss:$0 sm:$0xff] }
 0x3b1   :  { %v1225_v7 = vpack.c.bf16 %v1224_v32, %v1224_v32 }
 0x3b3   :  { %2385 = vmatmul.mubr.msk.bf16.vlgmr.msra.gmra.mrb[16].mxu1 %vm1112_vm8, %v1225_v7  ;;  %v1424_v9 = vpop.xlane.xlu1 %1423 }
 0x3b4   :  { %2675 = vrcp.f32 %v1424_v9  ;;  %2395 = vmatpush3.bf16.msra.mxu1 %v1332_v6  ;;  %2396 = vmatprep.mubr.msk.bf16.mxu1 %vm2872_vm7, %v2871_v40 }
 0x3b5   :  { %2406 = vmatprep.subr.bf16.mxu1 %v2871_v40 }
 0x3b6   :  { %v2674_v54 = vpop.eup %2673 }
 0x3b7   :  { %v1325_v10 = vmul.f32 %v2674_v54, %v3107_v31  ;;  %v2639_v31 = vld [vmem:[#allocation10 + $0xe8] sm:$0xff]  }
 0x3b9   :  { %v1326_v11 = vpack.c.bf16 %v1325_v10, %v1325_v10 }
 0x3bb   :  { %2397 = vmatmul.mubr.msk.bf16.vlgmr.msra.gmra.mrb[20].mxu1 %vm1112_vm8, %v1326_v11  ;;  %v2646_v11 = vld [vmem:[#allocation12 + $0x8] sm:$0xff]  }
 0x3bc   :  { %2407 = vmatpush3.bf16.msra.mxu1 %v1433_v46  ;;  %2408 = vmatprep.mubr.msk.bf16.mxu1 %vm2872_vm7, %v2871_v40 }
 0x3bd   :  { %2324 = vmatprep.subr.bf16.mxu1 %v2622_v38 }
 0x3be   :  { %v2676_v12 = vpop.eup %2675 }
 0x3bf   :  { %v1426_v13 = vmul.f32 %v2676_v12, %v3111_v34  ;;  %v2641_v34 = vld [vmem:[#allocation10 + $0xf0] sm:$0xff]  }
 0x3c1   :  { %v1427_v15 = vpack.c.bf16 %v1426_v13, %v1426_v13 }
 0x3c3   :  { %2409 = vmatmul.mubr.msk.bf16.vlgmr.msra.gmra.mrb[24].mxu1 %vm1112_vm8, %v1427_v15  ;;  %v2648_v15 = vld [vmem:[#allocation12 + $0x18] sm:$0xff]  }
 0x3c4   :  { %2325 = vmatpush3.bf16.msra.mxu1 %v2624_v14  ;;  %v2647_v14 = vld [vmem:[#allocation12 + $0x10] sm:$0xff]  }
 0x3c5   :  { %2326 = vmatprep.subr.bf16.mxu1 %v2626_v17  ;;  %v2651_v17 = vld [vmem:[#allocation12 + $0x30] sm:$0xff]  }
 0x3c8   :  { %2327 = vmatpush3.bf16.msra.mxu1 %v2628_v19  ;;  %v2653_v19 = vld [vmem:[#allocation13] sm:$0xff]  }
 0x3c9   :  { %2328 = vmatprep.subr.bf16.mxu1 %v2630_v22  ;;  %v2655_v22 = vld [vmem:[#allocation13 + $0x10] sm:$0xff]  }
 0x3cc   :  { %2329 = vmatpush3.bf16.msra.mxu1 %v2632_v24  ;;  %v2657_v24 = vld [vmem:[#allocation13 + $0x20] sm:$0xff]  }
 0x3cd   :  { %2330 = vmatprep.subr.bf16.mxu1 %v2634_v26 }
 0x3d0   :  { %2331 = vmatpush3.bf16.msra.mxu1 %v2636_v28 }
 0x3d1   :  { %2332 = vmatprep.subr.bf16.mxu1 %v2637_v29 }
 0x3d4   :  { %2333 = vmatpush3.bf16.msra.mxu1 %v2638_v30 }
 0x3d5   :  { %2334 = vmatprep.subr.bf16.mxu1 %v2639_v31 }
 0x3d8   :  { %2335 = vmatpush3.bf16.msra.mxu1 %v2640_v33 }
 0x3d9   :  { %2336 = vmatprep.subr.bf16.mxu1 %v2641_v34  ;;  %v2264_v34 = vld [vmem:[%s3204_s8 + $0x2] ss:$0 sm:$0xff] }
 0x3dc   :  { %2337 = vmatpush3.bf16.msra.mxu1 %v2642_v35 }
 0x3dd   :  { %2338 = vmatprep.subr.bf16.mxu1 %v2643_v36  ;;  %v2265_v36 = vld [vmem:[%s3204_s8 + $0x3] ss:$0 sm:$0xff] }
 0x3e0   :  { %2339 = vmatpush3.bf16.msra.mxu1 %v2644_v0 }
 0x3e1   :  { %2432 = vmatprep.subr.bf16.mxu1 %v2871_v40 }
 0x47e   :  { %v1166_v37 = vpop.f32.mrb[12].mxu1 }
 0x47f   :  { %v2374_v39 = vpop.f32.mrb[13].mxu1  ;;  %v1475_v47 = vpack.c.bf16 %v1166_v37, %v1166_v37 }
 0x480   :  { %v1169_v41 = vpop.f32.mrb[14].mxu1 }
 0x481   :  { %v2375_v42 = vpop.f32.mrb[15].mxu1  ;;  %v2659_v41 = vld [vmem:[#allocation13 + $0x30] sm:$0xff]  }
 0x482   :  { %v2660_v42 = vld [vmem:[#allocation13 + $0x38] sm:$0xff]  }
 0x486   :  { %v1267_v43 = vpop.f32.mrb[16].mxu1 }
 0x487   :  { %v1476_v44 = vpack.c.bf16 %v1267_v43, %v1267_v43  ;;  %v2386_v45 = vpop.f32.mrb[17].mxu1  ;;  %v2266_v43 = vld [vmem:[%s3202_s6] ss:$0 sm:$0xff] }
 0x488   :  { %v1270_v48 = vpop.f32.mrb[18].mxu1 }
 0x489   :  { %v2387_v49 = vpop.f32.mrb[19].mxu1  ;;  %1772 = vmatprep.mubr.bf16.mxu0 %v1476_v44 }
 0x48a   :  { %1773 = vmatmul.mubr.bf16.vlgmr.msra.gmra.mrb[28].mxu0 %v1475_v47 }
 0x48b   :  { %2428 = vmatprep.mubr.msk.bf16.mxu0 %vm2872_vm7, %v2871_v40  ;;  %2413 = vmatpush3.bf16.msra.mxu0 %v2645_v5 }
 0x48c   :  { %2414 = vmatprep.subr.bf16.mxu0 %v2871_v40 }
 0x48e   :  { %v1368_v52 = vpop.f32.mrb[20].mxu1 }
 0x48f   :  { %v2398_v53 = vpop.f32.mrb[21].mxu1  ;;  %v1477_v60 = vpack.c.bf16 %v1368_v52, %v1368_v52  ;;  %2415 = vmatpush3.bf16.msra.mxu0 %v2646_v11 }
 0x490   :  { %v1371_v55 = vpop.f32.mrb[22].mxu1  ;;  %2416 = vmatprep.subr.bf16.mxu0 %v2871_v40 }
 0x491   :  { %v2399_v56 = vpop.f32.mrb[23].mxu1  ;;  %v2275_v55 = vld [vmem:[%s3204_s8 + $0x1] ss:$0 sm:$0xff] }
 0x493   :  { %2417 = vmatpush3.bf16.msra.mxu0 %v2647_v14 }
 0x494   :  { %2418 = vmatprep.subr.bf16.mxu0 %v2871_v40 }
 0x496   :  { %v1469_v57 = vpop.f32.mrb[24].mxu1 }
 0x497   :  { %v1478_v58 = vpack.c.bf16 %v1469_v57, %v1469_v57  ;;  %v2410_v59 = vpop.f32.mrb[25].mxu1  ;;  %2419 = vmatpush3.bf16.msra.mxu0 %v2648_v15 }
 0x498   :  { %v1472_v61 = vpop.f32.mrb[26].mxu1  ;;  %2420 = vmatprep.subr.bf16.mxu0 %v2871_v40 }
 0x499   :  { %v2411_v62 = vpop.f32.mrb[27].mxu1  ;;  %1812 = vmatprep.mubr.bf16.mxu1 %v1478_v58 }
 0x49a   :  { %1813 = vmatmul.mubr.bf16.vlgmr.msra.gmra.mrb[28].mxu1 %v1477_v60 }
 0x49b   :  { %2448 = vmatprep.mubr.msk.bf16.mxu1 %vm2872_vm7, %v2871_v40  ;;  %2433 = vmatpush3.bf16.msra.mxu1 %v2653_v19 }
 0x49c   :  { %2434 = vmatprep.subr.bf16.mxu1 %v2871_v40 }
 0x49f   :  { %2435 = vmatpush3.bf16.msra.mxu1 %v2654_v21 }
 0x4a0   :  { %2436 = vmatprep.subr.bf16.mxu1 %v2871_v40 }
 0x4a3   :  { %2437 = vmatpush3.bf16.msra.mxu1 %v2655_v22 }
 0x4a4   :  { %2438 = vmatprep.subr.bf16.mxu1 %v2871_v40 }
 0x4a7   :  { %2439 = vmatpush3.bf16.msra.mxu1 %v2656_v23 }
 0x4a8   :  { %2440 = vmatprep.subr.bf16.mxu1 %v2871_v40 }
 0x4ab   :  { %2441 = vmatpush3.bf16.msra.mxu1 %v2657_v24 }
 0x4ac   :  { %2442 = vmatprep.subr.bf16.mxu1 %v2871_v40 }
 0x4af   :  { %2443 = vmatpush3.bf16.msra.mxu1 %v2658_v25 }
 0x4b0   :  { %2444 = vmatprep.subr.bf16.mxu1 %v2871_v40 }
 0x4b3   :  { %2445 = vmatpush3.bf16.msra.mxu1 %v2659_v41 }
 0x4b4   :  { %2446 = vmatprep.subr.bf16.mxu1 %v2871_v40 }
 0x4b7   :  { %2447 = vmatpush3.bf16.msra.mxu1 %v2660_v42 }
 0x55d   :  { %v2318_v63 = vpop.f32.mrb[28].mxu0 }
 0x55e   :  { %v2319_v1 = vpop.f32.mrb[29].mxu0 }
 0x55f   :  { %v2320_v2 = vadd.f32 %v2319_v1, %v2318_v63  ;;  %v2321_v3 = vpop.f32.mrb[30].mxu0 }
 0x560   :  { %v2322_v20 = vpop.f32.mrb[31].mxu0 }
 0x561   :  { %v1775_v6 = vadd.f32 %v2320_v2, %v2231_v50 }
 0x56d   :  { %v2340_v32 = vpop.f32.mrb[28].mxu1 }
 0x56e   :  { %v2341_v4 = vpop.f32.mrb[29].mxu1 }
 0x56f   :  { %v2342_v7 = vadd.f32 %v2341_v4, %v2340_v32  ;;  %v2343_v8 = vpop.f32.mrb[30].mxu1 }
 0x570   :  { %v2344_v9 = vpop.f32.mrb[31].mxu1 }
 0x571   :  { %v1815_v54 = vadd.f32 %v2342_v7, %v1775_v6  ;;  %v2284_v7 = vld [vmem:[%s3204_s8 + $0x4] ss:$0 sm:$0xff]  ;;  %v2285_v9 = vld [vmem:[%s3204_s8 + $0x5] ss:$0 sm:$0xff] }
 0x573   :  { %v1820_v10 = vadd.f32 %v1815_v54, %v3047_v51  ;;  %v2649_v51 = vld [vmem:[#allocation12 + $0x20] sm:$0xff]  }
 0x574   :  { %2421 = vmatpush3.bf16.msra.mxu0 %v2649_v51 }
 0x575   :  { %1823 = vadd.xlane.f32.xlu0 %v1820_v10  ;;  %2422 = vmatprep.subr.bf16.mxu0 %v2871_v40 }
 0x578   :  { %2423 = vmatpush3.bf16.msra.mxu0 %v2650_v16 }
 0x579   :  { %2424 = vmatprep.subr.bf16.mxu0 %v2871_v40 }
 0x57c   :  { %2425 = vmatpush3.bf16.msra.mxu0 %v2651_v17 }
 0x57d   :  { %2426 = vmatprep.subr.bf16.mxu0 %v2871_v40 }
 0x580   :  { %2427 = vmatpush3.bf16.msra.mxu0 %v2652_v18 }
 0x602   :  { %v1824_v38 = vpop.xlane.xlu0 %1823 }
 0x603   :  { %v1825_v46 = vmul.f32 0.03125, %v1824_v38 }
 0x605   :  { %v1826_v12 = vsub.f32 %v1820_v10, %v1825_v46  ;;  %v1830_v26 = vmul.f32 96.0, %v1825_v46 }
 0x607   :  { %v1827_v13 = vmul.f32 %v1826_v12, %v1826_v12  ;;  %v1831_v27 = vmul.f32 %v1830_v26, %v1825_v46 }
 0x609   :  { %1828 = vadd.xlane.f32.xlu1 %v1827_v13 }
 0x696   :  { %v1829_v28 = vpop.xlane.xlu1 %1828 }
 0x697   :  { %v1832_v29 = vsub.f32 %v1829_v28, %v1831_v27 }
 0x699   :  { %v1833_v30 = vmul.f32 0.03125, %v1832_v29 }
 0x69b   :  { %v1834_v31 = vadd.f32 1e-05, %v1833_v30 }
 0x69d   :  { %2677 = vrsqrt.f32 %v1834_v31 }
 0x6a7   :  { %v2678_v33 = vpop.eup %2677 }
 0x6a8   :  { %v1836_v35 = vmul.f32 %v2678_v33, %v1826_v12 }
 0x6aa   :  { %v1841_v0 = vmul.f32 %v2264_v34, %v1836_v35 }
 0x6ac   :  { %v1846_v37 = vadd.f32 %v2265_v36, %v1841_v0 }
 0x6ae   :  { %v1847_v39 = vpack.c.bf16 %v1846_v37, %v1846_v37 }
 0x6b0   :  { %2429 = vmatmul.mubr.bf16.vlgmr.msra.gmra.mrb[32].mxu0 %v1847_v39 }
 0x783   :  { %v1953_v44 = vpop.f32.mrb[32].mxu0 }
 0x784   :  { %v1954_v45 = vadd.f32 %v2266_v43, %v1953_v44  ;;  %v2430_v47 = vpop.f32.mrb[33].mxu0 }
 0x785   :  { %v1956_v48 = vpop.f32.mrb[34].mxu0 }
 0x786   :  { %v1959_v49 = vmax.f32 %v1954_v45, 0.0  ;;  %v2431_v52 = vpop.f32.mrb[35].mxu0 }
 0x788   :  { %v1960_v53 = vpack.c.bf16 %v1959_v49, %v1959_v49 }
 0x78a   :  { %2449 = vmatmul.mubr.bf16.vlgmr.msra.gmra.mrb[32].mxu1 %v1960_v53 }
 0x85d   :  { %v2064_v56 = vpop.f32.mrb[32].mxu1 }
 0x85e   :  { %v2065_v40 = vadd.f32 %v2275_v55, %v2064_v56  ;;  %v2450_v57 = vpop.f32.mrb[33].mxu1 }
 0x85f   :  { %v2067_v58 = vpop.f32.mrb[34].mxu1 }
 0x860   :  { %v2451_v59 = vpop.f32.mrb[35].mxu1  ;;  %v2070_v60 = vadd.f32 %v2065_v40, %v1846_v37 }
 0x862   :  { %2073 = vadd.xlane.f32.xlu0 %v2070_v60 }
 0x8ef   :  { %v2074_v61 = vpop.xlane.xlu0 %2073 }
 0x8f0   :  { %v2075_v62 = vmul.f32 0.03125, %v2074_v61 }
 0x8f2   :  { %v2076_v63 = vsub.f32 %v2070_v60, %v2075_v62  ;;  %v2080_v2 = vmul.f32 96.0, %v2075_v62 }
 0x8f4   :  { %v2077_v1 = vmul.f32 %v2076_v63, %v2076_v63  ;;  %v2081_v3 = vmul.f32 %v2080_v2, %v2075_v62 }
 0x8f6   :  { %2078 = vadd.xlane.f32.xlu1 %v2077_v1 }
 0x983   :  { %v2079_v20 = vpop.xlane.xlu1 %2078 }
 0x984   :  { %v2082_v50 = vsub.f32 %v2079_v20, %v2081_v3 }
 0x986   :  { %v2083_v32 = vmul.f32 0.03125, %v2082_v50 }
 0x988   :  { %v2084_v4 = vadd.f32 1e-05, %v2083_v32 }
 0x98a   :  { %2679 = vrsqrt.f32 %v2084_v4 }
 0x994   :  { %v2680_v6 = vpop.eup %2679 }
 0x995   :  { %v2086_v8 = vmul.f32 %v2680_v6, %v2076_v63 }
 0x997   :  { %v2091_v54 = vmul.f32 %v2284_v7, %v2086_v8 }
 0x999   :  { %v2096_v10 = vadd.f32 %v2285_v9, %v2091_v54 }
 0x99b   :  { %2097 = vst [vmem:[#allocation15] sm:$0xff] %v2096_v10 }
 0x99c   :  { %2834 = shalt.err (!%p2831_p13)
}
 0x99d   :  { %s2835_s28 = scalar_lea.hbm %s3205_s9, 128 }
 0x99e   :  { %p2836_p0 = scmp.ne.s32.totalorder %s3205_s9, %s2835_s28  ;;  %p2839_p1 = scmp.lt.u32.totalorder %s2835_s28, %s3205_s9 }
 0x9a0   :  { %p2841_p2 = pnand %p2839_p1, %p2836_p0 }
 0x9a2   :  { %2844 = shalt.err (!%p2841_p2)
}
 0x9a3   :  { %2107 = dma.vmem_to_hbm [thread:$0]  %s2105_s7, 128, %s3205_s9, [#allocation6]  }
 0x9a4   :  { %2855 = dma.done.wait [#allocation6], 128  }
 0x9a5   :  { %2856 = vsyncadd [#allocation6], 4294967168 }
 0x9a6   :  { %2111 = vsyncpa [#allocation5], 1 }
 0x9a7   :  { %2112 = vsyncpa [#allocation8], 1 }
 0x9a8   :  { %2113 = vsyncpa [#allocation11], 1 }
 0x9a9   :  { %2114 = vsyncpa [#allocation14], 1 }
 0x9aa   :  { %2115 = vsyncpa [#allocation6], 1 }

</bundles_post_ra>
